<compile_context>
chip_gen: v5e
topology: v5e:2x2
jax: 0.10.0
libtpu: 0.0.40
codegen_flags: <defaults>
</compile_context>

<pallas_src>
import jax
import jax.numpy as jnp
from jax.experimental import pallas as pl
from jax.experimental.pallas import tpu as pltpu

TM = 256                      # node-row tile (multiple of 256: MXU friendly on v6e/v7x)
TK = 512                      # neighbor (contraction) tile; A block = 256 KiB bf16
LANE = 128
VMEM_LIMIT = 32 * 1024 * 1024  # >> ~1.5 MiB tile plan, safe headroom on v5e/v6e/v7x


def _round_up(n, m):
    return ((n + m - 1) // m) * m


# --------------------- kernel 1: SAGEConv1 + ReLU ---------------------------
def conv1_kernel(a_ref, xk_ref, xi_ref, invdeg_ref, w1l_ref, w1r_ref, b1_ref,
                 h1_ref, acc_ref):
    k = pl.program_id(1)

    @pl.when(k == 0)
    def _():
        acc_ref[...] = jnp.zeros_like(acc_ref)

    # Neighbor-sum accumulation over the K (neighbor) axis: A_tile @ X_tile.
    acc_ref[...] += jnp.dot(a_ref[...], xk_ref[...],
                            preferred_element_type=jnp.float32)

    @pl.when(k == pl.num_programs(1) - 1)
    def _():
        # mean aggregation = accumulated sum * 1/in_degree (free VPU scale).
        agg = (acc_ref[...] * invdeg_ref[...]).astype(jnp.bfloat16)
        z = (jnp.dot(agg, w1l_ref[...], preferred_element_type=jnp.float32)
             + jnp.dot(xi_ref[...], w1r_ref[...],
                       preferred_element_type=jnp.float32)
             + b1_ref[...])
        # ReLU in f32; dropout(p=0.5) is identity at inference.
        h1_ref[...] = jnp.maximum(z, 0.0).astype(h1_ref.dtype)


# ------------- kernel 2: SAGEConv2 + ReLU + fused mean-pool partials --------
def conv2_pool_kernel(a_ref, hk_ref, hi_ref, invdeg_ref, p_ref, w2_ref, b2_ref,
                      pp_ref, acc_ref):
    k = pl.program_id(1)

    @pl.when(k == 0)
    def _():
        acc_ref[...] = jnp.zeros_like(acc_ref)

    acc_ref[...] += jnp.dot(a_ref[...], hk_ref[...],
                            preferred_element_type=jnp.float32)

    @pl.when(k == pl.num_programs(1) - 1)
    def _():
        agg = (acc_ref[...] * invdeg_ref[...]).astype(jnp.bfloat16)
        # fused lin_l/lin_r: concat([agg, h_self], -1) @ [W_l; W_r]  (one MXU pass,
        # 128-aligned concat, K = 256 matches v6e/v7x MXU contraction).
        zin = jnp.concatenate([agg, hi_ref[...]], axis=-1)
        z = jnp.dot(zin, w2_ref[...], preferred_element_type=jnp.float32) + b2_ref[...]
        h2 = jnp.maximum(z, 0.0)
        # fused global_mean_pool partial for this row tile: P_tile @ h2_tile.
        pp_ref[0] = jnp.dot(p_ref[...], h2.astype(jnp.bfloat16),
                            preferred_element_type=jnp.float32)


# ---------------- kernel 3: reduce pooled partials + final Linear -----------
def pool_linear_kernel(pp_ref, wlin_ref, blin_ref, out_ref):
    pooled = jnp.sum(pp_ref[...], axis=0)                      # (G, Hp) f32
    out_ref[...] = (jnp.dot(pooled.astype(jnp.bfloat16), wlin_ref[...],
                            preferred_element_type=jnp.float32)
                    + blin_ref[...])


# ----------------------------- wrapper ---------------------------------------
def solidity_gnn_forward(x, edge_index, batch, num_graphs, params):
    (w1l, b1l, w1r, w2l, b2l, w2r, wlin, blin) = params
    n, cin = x.shape
    hidden = w1l.shape[1]
    out_ch = wlin.shape[1]

    hp = _round_up(hidden, LANE)          # lane-dense hidden (padded weights are 0)
    op = _round_up(out_ch, LANE)          # lane-dense final store; sliced afterwards
    npad = _round_up(max(n, TK), TK)      # divisible by both TM and TK

    # --- raw adjacency (bf16) + inv_degree vector; no second N x N array -----
    src, dst = edge_index[0], edge_index[1]
    adj = jnp.zeros((npad, npad), jnp.float32).at[dst, src].add(1.0)
    deg = adj.sum(axis=1, keepdims=True)
    inv_deg = jnp.where(deg > 0.0, 1.0 / jnp.maximum(deg, 1.0), 0.0)  # (npad,1) f32
    adj_bf = adj.astype(jnp.bfloat16)

    # --- mean-pool matrix (G, npad); padded node columns are zero ------------
    onehot = (batch[None, :] == jnp.arange(num_graphs)[:, None]).astype(jnp.float32)
    counts = onehot.sum(axis=1, keepdims=True)
    p_bf = jnp.pad(onehot / jnp.maximum(counts, 1.0),
                   ((0, 0), (0, npad - n))).astype(jnp.bfloat16)

    x_bf = jnp.pad(x, ((0, npad - n), (0, 0))).astype(jnp.bfloat16)

    def pad2(w, r, c):
        return jnp.pad(w, ((0, r - w.shape[0]), (0, c - w.shape[1])))

    w1l_bf = pad2(w1l, cin, hp).astype(jnp.bfloat16)
    w1r_bf = pad2(w1r, cin, hp).astype(jnp.bfloat16)
    b1_f = pad2(b1l, 1, hp)
    w2cat_bf = jnp.concatenate([pad2(w2l, hp, hp), pad2(w2r, hp, hp)],
                               axis=0).astype(jnp.bfloat16)       # (2*Hp, Hp)
    b2_f = pad2(b2l, 1, hp)
    wlin_bf = pad2(wlin, hp, op).astype(jnp.bfloat16)
    blin_f = pad2(blin, 1, op)

    n_row, n_k = npad // TM, npad // TK
    grid = (n_row, n_k)
    cparams = pltpu.CompilerParams(
        dimension_semantics=("parallel", "arbitrary"),
        vmem_limit_bytes=VMEM_LIMIT)

    # ---------------- layer 1 ----------------
    h1 = pl.pallas_call(
        conv1_kernel,
        out_shape=jax.ShapeDtypeStruct((npad, hp), jnp.bfloat16),
        grid=grid,
        in_specs=[
            pl.BlockSpec((TM, TK), lambda i, k: (i, k)),          # A tile
            pl.BlockSpec((TK, cin), lambda i, k: (k, 0)),         # X (neighbors)
            pl.BlockSpec((TM, cin), lambda i, k: (i, 0)),         # X (self)
            pl.BlockSpec((TM, 1), lambda i, k: (i, 0)),           # inv_deg
            pl.BlockSpec((cin, hp), lambda i, k: (0, 0)),         # W_l (resident)
            pl.BlockSpec((cin, hp), lambda i, k: (0, 0)),         # W_r (resident)
            pl.BlockSpec((1, hp), lambda i, k: (0, 0)),           # bias (resident)
        ],
        out_specs=pl.BlockSpec((TM, hp), lambda i, k: (i, 0)),
        scratch_shapes=[pltpu.VMEM((TM, cin), jnp.float32)],
        compiler_params=cparams,
    )(adj_bf, x_bf, x_bf, inv_deg, w1l_bf, w1r_bf, b1_f)

    # ---------------- layer 2 + fused global_mean_pool partials ----------------
    pooled_parts = pl.pallas_call(
        conv2_pool_kernel,
        out_shape=jax.ShapeDtypeStruct((n_row, num_graphs, hp), jnp.float32),
        grid=grid,
        in_specs=[
            pl.BlockSpec((TM, TK), lambda i, k: (i, k)),          # A tile
            pl.BlockSpec((TK, hp), lambda i, k: (k, 0)),          # H1 (neighbors)
            pl.BlockSpec((TM, hp), lambda i, k: (i, 0)),          # H1 (self)
            pl.BlockSpec((TM, 1), lambda i, k: (i, 0)),           # inv_deg
            pl.BlockSpec((num_graphs, TM), lambda i, k: (0, i)),  # P_mean tile
            pl.BlockSpec((2 * hp, hp), lambda i, k: (0, 0)),      # [W_l; W_r] fused
            pl.BlockSpec((1, hp), lambda i, k: (0, 0)),           # bias
        ],
        out_specs=pl.BlockSpec((1, num_graphs, hp), lambda i, k: (i, 0, 0)),
        scratch_shapes=[pltpu.VMEM((TM, hp), jnp.float32)],
        compiler_params=cparams,
    )(adj_bf, h1, h1, inv_deg, p_bf, w2cat_bf, b2_f)

    # ---------------- finalize: sum partials + Linear ----------------
    vmem = pl.BlockSpec(memory_space=pltpu.MemorySpace.VMEM)
    out_pad = pl.pallas_call(
        pool_linear_kernel,
        out_shape=jax.ShapeDtypeStruct((num_graphs, op), jnp.float32),
        in_specs=[vmem, vmem, vmem],
        out_specs=vmem,
        compiler_params=pltpu.CompilerParams(vmem_limit_bytes=VMEM_LIMIT),
    )(pooled_parts, wlin_bf, blin_f)

    return out_pad[:, :out_ch]


# ----------------------------- params / reference ---------------------------
def init_params(key, in_channels, hidden_channels, out_channels):
    """Weights stored pre-transposed as [in, out]; biases as [1, out]."""
    ks = jax.random.split(key, 8)

    def lin_w(k, fi, fo):
        b = 1.0 / jnp.sqrt(fi)
        return jax.random.uniform(k, (fi, fo), jnp.float32, -b, b)

    def lin_b(k, fi, fo):
        b = 1.0 / jnp.sqrt(fi)
        return jax.random.uniform(k, (1, fo), jnp.float32, -b, b)

    return (lin_w(ks[0], in_channels, hidden_channels),
            lin_b(ks[1], in_channels, hidden_channels),
            lin_w(ks[2], in_channels, hidden_channels),
            lin_w(ks[3], hidden_channels, hidden_channels),
            lin_b(ks[4], hidden_channels, hidden_channels),
            lin_w(ks[5], hidden_channels, hidden_channels),
            lin_w(ks[6], hidden_channels, out_channels),
            lin_b(ks[7], hidden_channels, out_channels))


def _reference_forward(x, edge_index, batch, num_graphs, params):
    (w1l, b1l, w1r, w2l, b2l, w2r, wlin, blin) = params
    n = x.shape[0]
    src, dst = edge_index[0], edge_index[1]
    adj = jnp.zeros((n, n), jnp.float32).at[dst, src].add(1.0)
    a_mean = adj / jnp.maximum(adj.sum(axis=1, keepdims=True), 1.0)
    h1 = jnp.maximum(a_mean @ x @ w1l + b1l + x @ w1r, 0.0)
    h2 = jnp.maximum(a_mean @ h1 @ w2l + b2l + h1 @ w2r, 0.0)
    pool = jax.nn.one_hot(batch, num_graphs, dtype=jnp.float32).T
    pool = pool / jnp.maximum(pool.sum(axis=1, keepdims=True), 1.0)
    return pool @ h2 @ wlin + blin


if __name__ == "__main__":
    key = jax.random.PRNGKey(0)
    in_channels, hidden_channels, out_channels = 8, 32, 4
    num_nodes, num_graphs = 16, 2

    k_x, k_p = jax.random.split(key)
    x = jax.random.normal(k_x, (num_nodes, in_channels), jnp.float32)

    # Two ring graphs of 8 nodes each (edges both ways), deterministic.
    src, dst = [], []
    for g in range(num_graphs):
        base = g * 8
        for i in range(8):
            a, b = base + i, base + (i + 1) % 8
            src += [a, b]
            dst += [b, a]
    edge_index = jnp.array([src, dst], dtype=jnp.int32)
    batch = jnp.array([0] * 8 + [1] * 8, dtype=jnp.int32)

    params = init_params(k_p, in_channels, hidden_channels, out_channels)

    out = solidity_gnn_forward(x, edge_index, batch, num_graphs, params)
    jax.block_until_ready(out)
    assert out.shape == (num_graphs, out_channels)

    # Validate against a pure-JAX f32 reference (bf16 MXU operands -> loose tol).
    ref = _reference_forward(x, edge_index, batch, num_graphs, params)
    assert jnp.allclose(out, ref, atol=5e-2, rtol=5e-2)

    print("KERNEL_OK")
</pallas_src>

<mosaic_0001>
module attributes {stable_mosaic.version = 11 : i64} {
  func.func @conv1_kernel(%arg0: i32, %arg1: i32, %arg2: memref<256x512xbf16, #tpu.memory_space<vmem>>, %arg3: memref<512x8xbf16, #tpu.memory_space<vmem>>, %arg4: memref<256x8xbf16, #tpu.memory_space<vmem>>, %arg5: memref<256x1xf32, #tpu.memory_space<vmem>>, %arg6: memref<8x128xbf16, #tpu.memory_space<vmem>>, %arg7: memref<8x128xbf16, #tpu.memory_space<vmem>>, %arg8: memref<1x128xf32, #tpu.memory_space<vmem>>, %arg9: memref<256x128xbf16, #tpu.memory_space<vmem>>, %arg10: memref<256x8xf32, #tpu.memory_space<vmem>>) attributes {dimension_semantics = [#tpu.dimension_semantics<parallel>, #tpu.dimension_semantics<arbitrary>], iteration_bounds = array<i64: 2, 1>, scalar_prefetch = 0 : i64, scratch_operands = 1 : i64, tpu.core_type = #tpu.core_type<tc>, window_params = [{transform_indices = @transform_0, window_bounds = array<i64: 256, 512>}, {transform_indices = @transform_1, window_bounds = array<i64: 512, 8>}, {transform_indices = @transform_2, window_bounds = array<i64: 256, 8>}, {transform_indices = @transform_3, window_bounds = array<i64: 256, 1>}, {pipeline_mode = #tpu.pipeline_mode<synchronous>, transform_indices = @transform_4, window_bounds = array<i64: 8, 128>}, {pipeline_mode = #tpu.pipeline_mode<synchronous>, transform_indices = @transform_5, window_bounds = array<i64: 8, 128>}, {pipeline_mode = #tpu.pipeline_mode<synchronous>, transform_indices = @transform_6, window_bounds = array<i64: 1, 128>}, {transform_indices = @transform_7, window_bounds = array<i64: 256, 128>}]} {
    %c0_i32 = arith.constant 0 : i32
    %0 = arith.cmpi eq, %arg1, %c0_i32 : i32
    %1 = arith.extui %0 : i1 to i32
    %c0_i32_0 = arith.constant 0 : i32
    %2 = arith.cmpi ne, %1, %c0_i32_0 : i32
    scf.if %2 {
      %cst_10 = arith.constant 0.000000e+00 : f32
      %12 = vector.broadcast %cst_10 : f32 to vector<256x8xf32>
      %c0_11 = arith.constant 0 : index
      %c0_12 = arith.constant 0 : index
      %13 = vector.load %arg10[%c0_11, %c0_12] : memref<256x8xf32, #tpu.memory_space<vmem>>, vector<256x8xf32>
      tpu.vector_store %arg10[%c0_11, %c0_12], %12 {strides = array<i32>} : memref<256x8xf32, #tpu.memory_space<vmem>>, vector<256x8xf32>,
    } else {
    }
    %c0 = arith.constant 0 : index
    %c0_1 = arith.constant 0 : index
    %3 = vector.load %arg10[%c0, %c0_1] : memref<256x8xf32, #tpu.memory_space<vmem>>, vector<256x8xf32>
    %c0_2 = arith.constant 0 : index
    %c0_3 = arith.constant 0 : index
    %4 = vector.load %arg2[%c0_2, %c0_3] : memref<256x512xbf16, #tpu.memory_space<vmem>>, vector<256x512xbf16>
    %c0_4 = arith.constant 0 : index
    %c0_5 = arith.constant 0 : index
    %5 = vector.load %arg3[%c0_4, %c0_5] : memref<512x8xbf16, #tpu.memory_space<vmem>>, vector<512x8xbf16>
    %cst = arith.constant dense<0.000000e+00> : vector<256x8xf32>
    %6 = tpu.matmul %4, %5, %cst {dimension_numbers = #tpu.dot_dimension_numbers<[1], [0], [0], [1], [0, 0, 1, 1], [], []>} : vector<256x512xbf16>, vector<512x8xbf16>, vector<256x8xf32> -> vector<256x8xf32>
    %7 = arith.addf %3, %6 : vector<256x8xf32>
    %c0_6 = arith.constant 0 : index
    %c0_7 = arith.constant 0 : index
    %8 = vector.load %arg10[%c0_6, %c0_7] : memref<256x8xf32, #tpu.memory_space<vmem>>, vector<256x8xf32>
    tpu.vector_store %arg10[%c0_6, %c0_7], %7 {strides = array<i32>} : memref<256x8xf32, #tpu.memory_space<vmem>>, vector<256x8xf32>,
    %c0_i32_8 = arith.constant 0 : i32
    %9 = arith.cmpi eq, %arg1, %c0_i32_8 : i32
    %10 = arith.extui %9 : i1 to i32
    %c0_i32_9 = arith.constant 0 : i32
    %11 = arith.cmpi ne, %10, %c0_i32_9 : i32
    scf.if %11 {
      %c0_10 = arith.constant 0 : index
      %c0_11 = arith.constant 0 : index
      %12 = vector.load %arg10[%c0_10, %c0_11] : memref<256x8xf32, #tpu.memory_space<vmem>>, vector<256x8xf32>
      %c0_12 = arith.constant 0 : index
      %c0_13 = arith.constant 0 : index
      %13 = vector.load %arg5[%c0_12, %c0_13] : memref<256x1xf32, #tpu.memory_space<vmem>>, vector<256x1xf32>
      %14 = vector.broadcast %13 : vector<256x1xf32> to vector<256x8xf32>
      %15 = arith.mulf %12, %14 : vector<256x8xf32>
      %16 = arith.truncf %15 : vector<256x8xf32> to vector<256x8xbf16>
      %c0_14 = arith.constant 0 : index
      %c0_15 = arith.constant 0 : index
      %17 = vector.load %arg6[%c0_14, %c0_15] : memref<8x128xbf16, #tpu.memory_space<vmem>>, vector<8x128xbf16>
      %cst_16 = arith.constant dense<0.000000e+00> : vector<256x128xf32>
      %18 = tpu.matmul %16, %17, %cst_16 {dimension_numbers = #tpu.dot_dimension_numbers<[1], [0], [0], [1], [0, 0, 1, 1], [], []>} : vector<256x8xbf16>, vector<8x128xbf16>, vector<256x128xf32> -> vector<256x128xf32>
      %c0_17 = arith.constant 0 : index
      %c0_18 = arith.constant 0 : index
      %19 = vector.load %arg4[%c0_17, %c0_18] : memref<256x8xbf16, #tpu.memory_space<vmem>>, vector<256x8xbf16>
      %c0_19 = arith.constant 0 : index
      %c0_20 = arith.constant 0 : index
      %20 = vector.load %arg7[%c0_19, %c0_20] : memref<8x128xbf16, #tpu.memory_space<vmem>>, vector<8x128xbf16>
      %cst_21 = arith.constant dense<0.000000e+00> : vector<256x128xf32>
      %21 = tpu.matmul %19, %20, %cst_21 {dimension_numbers = #tpu.dot_dimension_numbers<[1], [0], [0], [1], [0, 0, 1, 1], [], []>} : vector<256x8xbf16>, vector<8x128xbf16>, vector<256x128xf32> -> vector<256x128xf32>
      %22 = arith.addf %18, %21 : vector<256x128xf32>
      %c0_22 = arith.constant 0 : index
      %c0_23 = arith.constant 0 : index
      %23 = vector.load %arg8[%c0_22, %c0_23] : memref<1x128xf32, #tpu.memory_space<vmem>>, vector<1x128xf32>
      %24 = vector.broadcast %23 : vector<1x128xf32> to vector<256x128xf32>
      %25 = arith.addf %22, %24 : vector<256x128xf32>
      %cst_24 = arith.constant 0.000000e+00 : f32
      %26 = vector.broadcast %cst_24 : f32 to vector<256x128xf32>
      %27 = arith.maximumf %25, %26 : vector<256x128xf32>
      %28 = arith.truncf %27 : vector<256x128xf32> to vector<256x128xbf16>
      %c0_25 = arith.constant 0 : index
      %c0_26 = arith.constant 0 : index
      %29 = vector.load %arg9[%c0_25, %c0_26] : memref<256x128xbf16, #tpu.memory_space<vmem>>, vector<256x128xbf16>
      tpu.vector_store %arg9[%c0_25, %c0_26], %28 {strides = array<i32>} : memref<256x128xbf16, #tpu.memory_space<vmem>>, vector<256x128xbf16>,
    } else {
    }
    return
  }
  func.func @transform_0(%arg0: i32, %arg1: i32) -> (i32, i32) {
    %c0_i32 = arith.constant 0 : i32
    return %arg0, %arg1 : i32, i32
  }
  func.func @transform_1(%arg0: i32, %arg1: i32) -> (i32, i32) {
    %c0_i32 = arith.constant 0 : i32
    %c0_i32_0 = arith.constant 0 : i32
    return %arg1, %c0_i32 : i32, i32
  }
  func.func @transform_2(%arg0: i32, %arg1: i32) -> (i32, i32) {
    %c0_i32 = arith.constant 0 : i32
    %c0_i32_0 = arith.constant 0 : i32
    return %arg0, %c0_i32 : i32, i32
  }
  func.func @transform_3(%arg0: i32, %arg1: i32) -> (i32, i32) {
    %c0_i32 = arith.constant 0 : i32
    %c0_i32_0 = arith.constant 0 : i32
    return %arg0, %c0_i32 : i32, i32
  }
  func.func @transform_4(%arg0: i32, %arg1: i32) -> (i32, i32) {
    %c0_i32 = arith.constant 0 : i32
    %c0_i32_0 = arith.constant 0 : i32
    %c0_i32_1 = arith.constant 0 : i32
    return %c0_i32, %c0_i32_0 : i32, i32
  }
  func.func @transform_5(%arg0: i32, %arg1: i32) -> (i32, i32) {
    %c0_i32 = arith.constant 0 : i32
    %c0_i32_0 = arith.constant 0 : i32
    %c0_i32_1 = arith.constant 0 : i32
    return %c0_i32, %c0_i32_0 : i32, i32
  }
  func.func @transform_6(%arg0: i32, %arg1: i32) -> (i32, i32) {
    %c0_i32 = arith.constant 0 : i32
    %c0_i32_0 = arith.constant 0 : i32
    %c0_i32_1 = arith.constant 0 : i32
    return %c0_i32, %c0_i32_0 : i32, i32
  }
  func.func @transform_7(%arg0: i32, %arg1: i32) -> (i32, i32) {
    %c0_i32 = arith.constant 0 : i32
    %c0_i32_0 = arith.constant 0 : i32
    return %arg0, %c0_i32 : i32, i32
  }
}

</mosaic_0001>

<bundles_post_ra>
// kernel: tpu_custom_call.1
= control target key start
LH: loop header
LB: loop body
LE: loop exit
PB: predicated region body
PF: predicated region fallthrough
CT: control target
= control target key end

     0   :  { %12 = vsyncpa [#allocation4], 0  ;;  %s4139_s0 = inlined_call_operand.hbm [shape: bf16[512,512], index: 0, kind: input, shape index: {}]   ;;  %s4140_s1 = inlined_call_operand.vmem [shape: bf16[512,8], index: 1, kind: input, shape index: {}]   ;;  %s4141_s2 = inlined_call_operand.vmem [shape: bf16[512,8], index: 2, kind: input, shape index: {}]   ;;  %s4142_s3 = inlined_call_operand.vmem [shape: f32[512,1], index: 3, kind: input, shape index: {}]   ;;  %s4143_s4 = inlined_call_operand.vmem [shape: bf16[8,128], index: 4, kind: input, shape index: {}]   ;;  %s4144_s5 = inlined_call_operand.vmem [shape: bf16[8,128], index: 5, kind: input, shape index: {}]   ;;  %s4145_s6 = inlined_call_operand.vmem [shape: f32[1,128], index: 6, kind: input, shape index: {}]   ;;  %s4146_s7 = inlined_call_operand.hbm [shape: bf16[512,128], index: 7, kind: output, shape index: {}]  }
   0x1   :  { %14 = vsyncpa [#allocation4 + $0x1], 0 }
   0x2   :  { %15 = vsyncpa [#allocation5], 0 }
   0x3   :  { %17 = vsyncpa [#allocation5 + $0x1], 0  ;;  %s3416_s24 = smov 0   ;;  %s3418_s25 = smov 0  }
   0x4   :  { %s3420_s26 = smov 0   ;;  %s3422_s27 = smov 0  }
   0x5   :  { %s3424_s28 = smov 0   ;;  %s3426_s29 = smov 0  }
   0x6 LB: > { %4149 = sst [smem:[#allocation9_spill]] %s3364_s28  ;;  %s2457_s30 = sadd.s32 4294967295, %s3368_s29   ;;  %s3368_s29 = sphi %s3426_s29, %s23_s29   ;;  %s3364_s28 = sphi %s3424_s28, %s4156_s28   ;;  %s3360_s27 = sphi %s3422_s27, %s4155_s27   ;;  %s3356_s26 = sphi %s3420_s26, %s4159_s26   ;;  %s3352_s25 = sphi %s3418_s25, %s4158_s25   ;;  %s3348_s24 = sphi %s3416_s24, %s4157_s24  }
   0x7   : > { %s2458_s8 = sadd.s32 4294967294, %s3368_s29   ;;  %s35_s9 = sadd.s32 1, %s3364_s28 }
   0x8   : > { %s44_s10 = sadd.s32 1, %s3356_s26  ;;  %p37_p0 = scmp.ge.s32.totalorder %s35_s9, 2 }
   0x9   : > { %p51_p1 = scmp.ne.s32.totalorder %s3356_s26, %s3352_s25  ;;  %p52_p2 = scmp.eq.s32.totalorder %s3368_s29, 0 }
   0xa   : > { %p57_p3 = scmp.ne.s32.totalorder %s3352_s25, %s3348_s24  ;;  %s4161_s9 = smov (%p37_p0, %s35_s9), 0 }
   0xb   : > { %4150 = sst [smem:[#allocation10_spill]] %s4161_s9  ;;  %p3457_p4 = por %p52_p2, %p51_p1 }
   0xc   : > { %p58_p5 = scmp.eq.s32.totalorder %s2457_s30, 0  ;;  %s39_s12 = ssub.s32 %s3364_s28, %s4161_s9 }
   0xd   : > { %p222_p6 = scmp.eq.s32.totalorder %s2457_s30, 1  ;;  %p42_p7 = scmp.eq.s32.totalorder %s39_s12, 0 }
   0xe   : > { %p3463_p8 = por %p58_p5, %p57_p3  ;;  %p228_p10 = scmp.eq.s32.totalorder %s2458_s8, 1 }
   0xf   : > { %p3467_p9 = por %p222_p6, %p51_p1  ;;  %p2461_p12 = scmp.ge.s32.totalorder %s3368_s29, 2 }
  0x10   : > { %s3472_s15 = scalar_select %p42_p7, %s3356_s26, %s44_s10  }
  0x11   : > { %p3474_p11 = por %p228_p10, %p57_p3  ;;  %p3196_p13 = scmp.lt.s32.totalorder %s3368_s29, 2 }
  0x12   : > { %s266_s17 = sand.u32 1, %s3356_s26   ;;  %s2959_s19 = sshll.u32 %s3364_s28, 9 }
  0x13   : > { %s2462_s18 = sshll.u32 %s266_s17, 9  ;;  %s278_s22 = scalar_lea.hbm %s4139_s0, %s2959_s19 }
  0x14   : > { %s270_s23 = scalar_lea.vmem [#allocation3], %s2462_s18  ;;  %s279_s12 = sshll.u32 %s278_s22, 4  ;;  %s280_s12 = int_to_ptr.hbm [resolvable:$true] %s279_s12 }
  0x15   : > { %s281_s30 = sshll.u32 %s270_s23, 4  ;;  %p3189_p0 = pnand %p3196_p13, %p3457_p4  ;;  %s282_s30 = int_to_ptr.vmem [resolvable:$true] %s281_s30 }
  0x16   : > { %p2466_p1 = scmp.ge.s32.totalorder %s3368_s29, 1  ;;  %s267_s8 = scalar_lea.sflag [#allocation4], %s266_s17 }
  0x17   : > { %s3370_s10 = smov 256   ;;  %s3371_s9 = smov 16  }
  0x18   : > { %3191 = dma.hbm_to_vmem [thread:$0]  (!%p3189_p0), %s280_s12, 8192, %s282_s30, %s267_s8, %s3370_s10, %s3370_s10, %s3371_s9  }
  0x19   : > { %p307_p2 = scmp.lt.s32.totalorder %s3368_s29, 3 }
  0x1b   : > { %p308_p3 = pnand %p2466_p1, %p307_p2 }
  0x1c   : > { %s3490_s28 = sand.u32 (!%p308_p3), 1, %s3352_s25  }
  0x1d   : > { %311 = sbr.rel (%p308_p3) target bundleno = 739 (0x2e3), region = 48  ;;  %s2467_s18 = sshll.u32 (!%p308_p3), %s3490_s28, 9 }
  0x1e   : > { %s314_s19 = scalar_lea.sflag (!%p308_p3), [#allocation4], %s3490_s28  ;;  %s3494_s20 = scalar_lea.vmem (!%p308_p3), [#allocation3], %s2467_s18 }
  0x22   : > { %3339 = dma.done.wait (%p3463_p8), %s314_s19, 8192  }
  0x23   : > { %3341 = vsyncadd (%p3463_p8), %s314_s19, 4294959104  ;;  %v3031_v0 = vld [vmem:[%s4140_s1 + $0x38] sm:$0xff]  ;;  %v3030_v2 = vld [vmem:[%s4140_s1 + $0x30] sm:$0xff]  ;;  %s2469_s23 = sshll.u32 %s3360_s27, 5  ;;  %v3372_v45 = vmov 0   ;;  %vm1953_vm0 = vcmask 1043456  }
  0x24   : > { %v3039_v1 = vld [vmem:[%s4140_s1 + $0x78] sm:$0xff]  ;;  %3168 = vmatpush.bf16.msra.mxu2 %v3031_v0  ;;  %v3038_v3 = vld [vmem:[%s4140_s1 + $0x70] sm:$0xff]  ;;  %1095 = vmatpush.bf16.msra.mxu0 %v3031_v0  ;;  %v3029_v4 = vld [vmem:[%s4140_s1 + $0x28] sm:$0xff]  ;;  %p373_p4 = scmp.lt.s32.totalorder %s2469_s23, 63  ;;  %vm390_vm1 = vcmask 64512   ;;  %s2468_s17 = sshll.u32 %s3490_s28, 7 }
  0x25   : > { %3176 = vmatpush.bf16.msra.mxu3 %v3039_v1  ;;  %1184 = vmatpush.bf16.msra.mxu1 %v3039_v1  ;;  %v3037_v5 = vld [vmem:[%s4140_s1 + $0x68] sm:$0xff]  ;;  %v3028_v6 = vld [vmem:[%s4140_s1 + $0x20] sm:$0xff]  ;;  %v3027_v8 = vld [vmem:[%s4140_s1 + $0x18] sm:$0xff]  ;;  %s3989_s21 = scalar_lea.vmem [#allocation6], %s2468_s17  ;;  %s3072_s22 = sshll.u32 %s3360_s27, 7 }
  0x26   : > { %v3036_v7 = vld [vmem:[%s4140_s1 + $0x60] sm:$0xff]  ;;  %v3035_v9 = vld [vmem:[%s4140_s1 + $0x58] sm:$0xff]  ;;  %v3026_v10 = vld [vmem:[%s4140_s1 + $0x10] sm:$0xff]  ;;  %s4163_s23 = smov (!%p373_p4, %s2469_s23), 63  ;;  %3252 = vset.pattern.permute.xlu0 %v3372_v45  ;;  %3253 = vset.pattern.permute.xlu1 %v3372_v45  ;;  %s2330_s13 = scalar_lea.hbm %s4146_s7, %s3072_s22 }
  0x27   : > { %v3034_v11 = vld [vmem:[%s4140_s1 + $0x50] sm:$0xff]  ;;  %v3025_v12 = vld [vmem:[%s4140_s1 + $0x8] sm:$0xff]  ;;  %v3024_v14 = vld [vmem:[%s4140_s1] sm:$0xff]  ;;  %s2472_s10 = sshll.u32 %s4163_s23, 3  ;;  %3254 = vset.pattern.permute.xlu2 %v3372_v45  ;;  %s2331_s8 = sshll.u32 %s3989_s21, 4  ;;  %s2332_s8 = int_to_ptr.vmem [resolvable:$true] %s2331_s8 }
  0x28   : > { %3169 = vmatpush.bf16.msra.mxu2 %v3030_v2  ;;  %1096 = vmatpush.bf16.msra.mxu0 %v3030_v2  ;;  %v3033_v13 = vld [vmem:[%s4140_s1 + $0x48] sm:$0xff]  ;;  %v3032_v15 = vld [vmem:[%s4140_s1 + $0x40] sm:$0xff]  ;;  %v2994_v17 = vld [vmem:[%s3494_s20 + $0x10c] sm:$0xf0]  ;;  %s3591_s11 = scalar_lea.vmem %s4142_s3, %s2472_s10  ;;  %s2333_s10 = sshll.u32 %s2330_s13, 4  ;;  %s2334_s10 = int_to_ptr.hbm [resolvable:$true] %s2333_s10 }
  0x29   : > { %3177 = vmatpush.bf16.msra.mxu3 %v3038_v3  ;;  %1185 = vmatpush.bf16.msra.mxu1 %v3038_v3  ;;  %v2603_v16 = vld [vmem:[%s3494_s20 + $0x100] sm:$0xf]  ;;  %v2992_v18 = vld [vmem:[%s3494_s20 + $0x104] sm:$0xf]  ;;  %v2605_v19 = vld [vmem:[%s3494_s20 + $0x110] sm:$0xf0] }
  0x2a   : > { %v3047_v20 = vld [vmem:[%s4140_s1 + $0xb8] sm:$0xff]  ;;  %v2604_v22 = vor.u32 %v2994_v17, %v2603_v16  ;;  %v2608_v23 = vor.u32 %v2992_v18, %v2605_v19  ;;  %v3046_v24 = vld [vmem:[%s4140_s1 + $0xb0] sm:$0xff]  ;;  %v3045_v26 = vld [vmem:[%s4140_s1 + $0xa8] sm:$0xff]  ;;  %s2319_s27 = scalar_lea.sflag [#allocation5], %s3490_s28 }
  0x2b   : > { %v3055_v21 = vld [vmem:[%s4140_s1 + $0xf8] sm:$0xff]  ;;  %v3054_v25 = vld [vmem:[%s4140_s1 + $0xf0] sm:$0xff]  ;;  %v3053_v27 = vld [vmem:[%s4140_s1 + $0xe8] sm:$0xff] }
  0x2c   : > { %3170 = vmatpush.bf16.msra.mxu2 %v3029_v4  ;;  %1097 = vmatpush.bf16.msra.mxu0 %v3029_v4  ;;  %v2619_v28 = vld [vmem:[%s3494_s20 + $0x120] sm:$0xf]  ;;  %v2998_v29 = vld [vmem:[%s3494_s20 + $0x12c] sm:$0xf0]  ;;  %v2996_v30 = vld [vmem:[%s3494_s20 + $0x124] sm:$0xf] }
  0x2d   : > { %3178 = vmatpush.bf16.msra.mxu3 %v3037_v5  ;;  %1186 = vmatpush.bf16.msra.mxu1 %v3037_v5  ;;  %v2621_v31 = vld [vmem:[%s3494_s20 + $0x130] sm:$0xf0]  ;;  %v2620_v32 = vor.u32 %v2998_v29, %v2619_v28  ;;  %v3044_v34 = vld [vmem:[%s4140_s1 + $0xa0] sm:$0xff]  ;;  %v3002_v37 = vld [vmem:[%s3494_s20 + $0x14c] sm:$0xf0] }
  0x2e   : > { %v2624_v33 = vor.u32 %v2996_v30, %v2621_v31  ;;  %v3052_v35 = vld [vmem:[%s4140_s1 + $0xe0] sm:$0xff]  ;;  %v2637_v39 = vld [vmem:[%s3494_s20 + $0x150] sm:$0xf0]  ;;  %v3043_v42 = vld [vmem:[%s4140_s1 + $0x98] sm:$0xff] }
  0x2f   : > { %v2635_v36 = vld [vmem:[%s3494_s20 + $0x140] sm:$0xf]  ;;  %v3000_v38 = vld [vmem:[%s3494_s20 + $0x144] sm:$0xf]  ;;  %v3051_v43 = vld [vmem:[%s4140_s1 + $0xd8] sm:$0xff] }
  0x30   : > { %3171 = vmatpush.bf16.msra.mxu2 %v3028_v6  ;;  %1098 = vmatpush.bf16.msra.mxu0 %v3028_v6  ;;  %v2636_v40 = vor.u32 %v3002_v37, %v2635_v36  ;;  %v2640_v41 = vor.u32 %v3000_v38, %v2637_v39  ;;  %v1551_v44 = vld [vmem:[%s3591_s11] sm:$0xff]  ;;  %v3006_v47 = vld [vmem:[%s3494_s20 + $0x16c] sm:$0xf0]  ;;  %v2653_v49 = vld [vmem:[%s3494_s20 + $0x170] sm:$0xf0] }
  0x31   : > { %3179 = vmatpush.bf16.msra.mxu3 %v3036_v7  ;;  %1187 = vmatpush.bf16.msra.mxu1 %v3036_v7  ;;  %v2651_v46 = vld [vmem:[%s3494_s20 + $0x160] sm:$0xf]  ;;  %v3004_v48 = vld [vmem:[%s3494_s20 + $0x164] sm:$0xf]  ;;  %v3042_v52 = vld [vmem:[%s4140_s1 + $0x90] sm:$0xff] }
  0x32   : > { %1585 = vperm.xlu0 %3252, %v1551_v44   ;;  %v2652_v50 = vor.u32 %v3006_v47, %v2651_v46  ;;  %v2656_v51 = vor.u32 %v3004_v48, %v2653_v49  ;;  %v3050_v53 = vld [vmem:[%s4140_s1 + $0xd0] sm:$0xff]  ;;  %v1552_v54 = vld [vmem:[%s3591_s11 + $0x8] sm:$0xff]  ;;  %v2667_v57 = vld [vmem:[%s3494_s20 + $0x180] sm:$0xf] }
  0x33   : > { %v1553_v55 = vld [vmem:[%s3591_s11 + $0x10] sm:$0xff]  ;;  %v3008_v59 = vld [vmem:[%s3494_s20 + $0x184] sm:$0xf]  ;;  %v3041_v63 = vld [vmem:[%s4140_s1 + $0x88] sm:$0xff] }
  0x34   : > { %3172 = vmatpush.bf16.msra.mxu2 %v3027_v8  ;;  %1099 = vmatpush.bf16.msra.mxu0 %v3027_v8  ;;  %v1557_v56 = vld [vmem:[%s3591_s11 + $0x30] sm:$0xff]  ;;  %v3049_v0 = vld [vmem:[%s4140_s1 + $0xc8] sm:$0xff]  ;;  %v1554_v1 = vld [vmem:[%s3591_s11 + $0x18] sm:$0xff] }
  0x35   : > { %3180 = vmatpush.bf16.msra.mxu3 %v3035_v9  ;;  %1188 = vmatpush.bf16.msra.mxu1 %v3035_v9  ;;  %v3010_v58 = vld [vmem:[%s3494_s20 + $0x18c] sm:$0xf0]  ;;  %v2669_v60 = vld [vmem:[%s3494_s20 + $0x190] sm:$0xf0]  ;;  %v1560_v2 = vld [vmem:[%s3591_s11 + $0x48] sm:$0xff] }
  0x36   : > { %1595 = vperm.xlu1 %3253, %v1553_v55   ;;  %v2668_v61 = vor.u32 %v3010_v58, %v2667_v57  ;;  %v2672_v62 = vor.u32 %v3008_v59, %v2669_v60  ;;  %v1558_v3 = vld [vmem:[%s3591_s11 + $0x38] sm:$0xff]  ;;  %v2683_v4 = vld [vmem:[%s3494_s20 + $0x1a0] sm:$0xf]  ;;  %v3014_v6 = vld [vmem:[%s3494_s20 + $0x1ac] sm:$0xf0] }
  0x37   : > { %v1563_v5 = vld [vmem:[%s3591_s11 + $0x60] sm:$0xff]  ;;  %v2685_v8 = vld [vmem:[%s3494_s20 + $0x1b0] sm:$0xf0]  ;;  %v2684_v9 = vor.u32 %v3014_v6, %v2683_v4  ;;  %v2962_v16 = vld [vmem:[%s3494_s20 + $0xc] sm:$0xf0] }
  0x38   : > { %3173 = vmatpush.bf16.msra.mxu2 %v3026_v10  ;;  %1100 = vmatpush.bf16.msra.mxu0 %v3026_v10  ;;  %v3012_v7 = vld [vmem:[%s3494_s20 + $0x1a4] sm:$0xf]  ;;  %v2477_v19 = vld [vmem:[%s3494_s20 + $0x10] sm:$0xf0]  ;;  %v1572_v30 = vld [vmem:[%s3591_s11 + $0xa8] sm:$0xff] }
  0x39   : > { %3181 = vmatpush.bf16.msra.mxu3 %v3034_v11  ;;  %1189 = vmatpush.bf16.msra.mxu1 %v3034_v11  ;;  %v2688_v10 = vor.u32 %v3012_v7, %v2685_v8  ;;  %v3040_v11 = vld [vmem:[%s4140_s1 + $0x80] sm:$0xff]  ;;  %v2966_v36 = vld [vmem:[%s3494_s20 + $0x2c] sm:$0xf0]  ;;  %v2493_v39 = vld [vmem:[%s3494_s20 + $0x30] sm:$0xf0] }
  0x3a   : > { %1590 = vperm.xlu0 %3252, %v1552_v54   ;;  %v2960_v18 = vld [vmem:[%s3494_s20 + $0x4] sm:$0xf]  ;;  %v2715_v31 = vld [vmem:[%s3494_s20 + $0x1e0] sm:$0xf]  ;;  %v1570_v44 = vld [vmem:[%s3591_s11 + $0x98] sm:$0xff] }
  0x3b   : > { %v1567_v29 = vld [vmem:[%s3591_s11 + $0x80] sm:$0xff]  ;;  %v1556_v46 = vld [vmem:[%s3591_s11 + $0x28] sm:$0xff]  ;;  %v1573_v47 = vld [vmem:[%s3591_s11 + $0xb0] sm:$0xff] }
  0x3c   : > { %3174 = vmatpush.bf16.msra.mxu2 %v3025_v12  ;;  %1101 = vmatpush.bf16.msra.mxu0 %v3025_v12  ;;  %v3048_v12 = vld [vmem:[%s4140_s1 + $0xc0] sm:$0xff]  ;;  %v1578_v48 = vld [vmem:[%s3591_s11 + $0xd8] sm:$0xff]  ;;  %v2483_v49 = vld [vmem:[%s3494_s20 + $0x8] sm:$0xf] }
  0x3d   : > { %3182 = vmatpush.bf16.msra.mxu3 %v3033_v13  ;;  %1190 = vmatpush.bf16.msra.mxu1 %v3033_v13  ;;  %v1561_v13 = vld [vmem:[%s3591_s11 + $0x50] sm:$0xff]  ;;  %v2964_v37 = vld [vmem:[%s3494_s20 + $0x24] sm:$0xf]  ;;  %v1562_v7 = vld [vmem:[%s3591_s11 + $0x58] sm:$0xff] }
  0x3e   : > { %1600 = vperm.xlu1 %3253, %v1554_v1   ;;  %v1575_v45 = vld [vmem:[%s3591_s11 + $0xc0] sm:$0xff]  ;;  %v2970_v54 = vld [vmem:[%s3494_s20 + $0x4c] sm:$0xf0]  ;;  %v2509_v57 = vld [vmem:[%s3494_s20 + $0x50] sm:$0xf0] }
  0x3f   : > { %v2968_v55 = vld [vmem:[%s3494_s20 + $0x44] sm:$0xf] }
  0x40   : > { %3175 = vmatpush.bf16.msra.mxu2 %v3024_v14  ;;  %1102 = vmatpush.bf16.msra.mxu0 %v3024_v14  ;;  %v1566_v14 = vld [vmem:[%s3591_s11 + $0x78] sm:$0xff]  ;;  %v2512_v58 = vor.u32 %v2968_v55, %v2509_v57  ;;  %v1579_v8 = vld [vmem:[%s3591_s11 + $0xe0] sm:$0xff]  ;;  %v2982_v55 = vld [vmem:[%s3494_s20 + $0xac] sm:$0xf0] }
  0x41   : > { %3183 = vmatpush.bf16.msra.mxu3 %v3032_v15  ;;  %1191 = vmatpush.bf16.msra.mxu1 %v3032_v15  ;;  %v2475_v15 = vld [vmem:[%s3494_s20] sm:$0xf] }
  0x42   : > { %1615 = vperm.xlu0 %3252, %v1557_v56   ;;  %v2476_v17 = vor.u32 %v2962_v16, %v2475_v15  ;;  %v2972_v15 = vld [vmem:[%s3494_s20 + $0x64] sm:$0xf] }
  0x43   : > { %1143 = vmatmul.bf16.vlgmr.msra.gmra.mxu2 %v2604_v22  ;;  %v2699_v22 = vld [vmem:[%s3494_s20 + $0x1c0] sm:$0xf] }
  0x44   : > { %1273 = vmatpush.bf16.msrb.mxu2 %v3047_v20  ;;  %1232 = vmatmul.bf16.vlgmr.msra.gmra.mxu3 %v2608_v23  ;;  %v2480_v20 = vor.u32 %v2960_v18, %v2477_v19  ;;  %v1569_v23 = vld [vmem:[%s3591_s11 + $0x90] sm:$0xff] }
  0x45   : > { %1362 = vmatpush.bf16.msrb.mxu3 %v3055_v21  ;;  %1103 = vmatmul.bf16.vlgmr.msra.gmra.mxu0 %v2476_v17  ;;  %v1564_v21 = vld [vmem:[%s3591_s11 + $0x68] sm:$0xff]  ;;  %v2525_v17 = vld [vmem:[%s3494_s20 + $0x70] sm:$0xf0] }
  0x46   : > { %1620 = vperm.xlu1 %3253, %v1558_v3   ;;  %1192 = vmatmul.bf16.vlgmr.msra.gmra.mxu1 %v2480_v20  ;;  %v1581_v3 = vld [vmem:[%s3591_s11 + $0xf0] sm:$0xff]  ;;  %v2528_v20 = vor.u32 %v2972_v15, %v2525_v17 }
  0x47   : > { %v2573_v15 = vld [vmem:[%s3494_s20 + $0xd0] sm:$0xf0] }
  0x48   : > { %1274 = vmatpush.bf16.msrb.mxu2 %v3046_v24  ;;  %v3018_v24 = vld [vmem:[%s3494_s20 + $0x1cc] sm:$0xf0] }
  0x49   : > { %1363 = vmatpush.bf16.msrb.mxu3 %v3054_v25  ;;  %v3016_v25 = vld [vmem:[%s3494_s20 + $0x1c4] sm:$0xf] }
  0x4a   : > { %1630 = vperm.xlu0 %3252, %v1560_v2   ;;  %v1576_v2 = vld [vmem:[%s3591_s11 + $0xc8] sm:$0xff] }
  0x4c   : > { %1275 = vmatpush.bf16.msrb.mxu2 %v3045_v26  ;;  %v2701_v26 = vld [vmem:[%s3494_s20 + $0x1d0] sm:$0xf0] }
  0x4d   : > { %1364 = vmatpush.bf16.msrb.mxu3 %v3053_v27  ;;  %v2700_v27 = vor.u32 %v3018_v24, %v2699_v22  ;;  %v2704_v28 = vor.u32 %v3016_v25, %v2701_v26  ;;  %v1565_v24 = vld [vmem:[%s3591_s11 + $0x70] sm:$0xff]  ;;  %v1582_v25 = vld [vmem:[%s3591_s11 + $0xf8] sm:$0xff] }
  0x4e   : > { %1635 = vperm.xlu1 %3253, %v1561_v13   ;;  %v2523_v13 = vld [vmem:[%s3494_s20 + $0x60] sm:$0xf] }
  0x50   : > { %1276 = vmatpush.bf16.msrb.mxu2 %v3044_v34  ;;  %v2717_v34 = vld [vmem:[%s3494_s20 + $0x1f0] sm:$0xf0] }
  0x51   : > { %1365 = vmatpush.bf16.msrb.mxu3 %v3052_v35  ;;  %v2491_v35 = vld [vmem:[%s3494_s20 + $0x20] sm:$0xf] }
  0x52   : > { %1645 = vperm.xlu0 %3252, %v1563_v5   ;;  %v2492_v38 = vor.u32 %v2966_v36, %v2491_v35  ;;  %v2978_v35 = vld [vmem:[%s3494_s20 + $0x8c] sm:$0xf0]  ;;  %v2976_v36 = vld [vmem:[%s3494_s20 + $0x84] sm:$0xf] }
  0x53   : > { %1148 = vmatmul.bf16.gmra.mxu2 %v2620_v32  ;;  %v3022_v32 = vld [vmem:[%s3494_s20 + $0x1ec] sm:$0xf0] }
  0x54   : > { %1237 = vmatmul.bf16.gmra.mxu3 %v2624_v33  ;;  %1277 = vmatpush.bf16.msrb.mxu2 %v3043_v42  ;;  %v3020_v33 = vld [vmem:[%s3494_s20 + $0x1e4] sm:$0xf] }
  0x55   : > { %1366 = vmatpush.bf16.msrb.mxu3 %v3051_v43  ;;  %v2720_v42 = vor.u32 %v3020_v33, %v2717_v34  ;;  %1108 = vmatmul.bf16.gmra.mxu0 %v2492_v38  ;;  %v1555_v43 = vld [vmem:[%s3591_s11 + $0x20] sm:$0xff]  ;;  %v2517_v33 = vld [vmem:[%s3494_s20 + $0x58] sm:$0xf0]  ;;  %v2541_v38 = vld [vmem:[%s3494_s20 + $0x90] sm:$0xf0] }
  0x56   : > { %1650 = vperm.xlu1 %3253, %v1564_v21   ;;  %1605 = vperm.xlu2 %3254, %v1555_v43   ;;  %v2539_v34 = vld [vmem:[%s3494_s20 + $0x80] sm:$0xf] }
  0x58   : > { %1278 = vmatpush.bf16.msrb.mxu2 %v3042_v52  ;;  %v2485_v52 = vld [vmem:[%s3494_s20 + $0x18] sm:$0xf0] }
  0x59   : > { %1367 = vmatpush.bf16.msrb.mxu3 %v3050_v53  ;;  %v2507_v53 = vld [vmem:[%s3494_s20 + $0x40] sm:$0xf] }
  0x5a   : > { %1660 = vperm.xlu0 %3252, %v1566_v14   ;;  %v2508_v56 = vor.u32 %v2970_v54, %v2507_v53  ;;  %v2974_v14 = vld [vmem:[%s3494_s20 + $0x6c] sm:$0xf0]  ;;  %v2533_v53 = vld [vmem:[%s3494_s20 + $0x78] sm:$0xf0]  ;;  %v2555_v54 = vld [vmem:[%s3494_s20 + $0xa0] sm:$0xf] }
  0x5b   : > { %v2524_v16 = vor.u32 %v2974_v14, %v2523_v13  ;;  %v2556_v57 = vor.u32 %v2982_v55, %v2555_v54  ;;  %v2984_v13 = vld [vmem:[%s3494_s20 + $0xc4] sm:$0xf] }
  0x5c   : > { %1279 = vmatpush.bf16.msrb.mxu2 %v3041_v63  ;;  %v1559_v63 = vld [vmem:[%s3591_s11 + $0x40] sm:$0xff] }
  0x5d   : > { %1368 = vmatpush.bf16.msrb.mxu3 %v3049_v0 }
  0x5e   : > { %1665 = vperm.xlu1 %3253, %v1567_v29   ;;  %1610 = vperm.xlu2 %3254, %v1556_v46   ;;  %v1568_v29 = vld [vmem:[%s3591_s11 + $0x88] sm:$0xff] }
  0x60   : > { %1280 = vmatpush.bf16.msrb.mxu2 %v3040_v11  ;;  %v2965_v11 = vld [vmem:[%s3494_s20 + $0x2c] sm:$0xf] }
  0x61   : > { %1369 = vmatpush.bf16.msrb.mxu3 %v3048_v12  ;;  %v2501_v12 = vld [vmem:[%s3494_s20 + $0x38] sm:$0xf0] }
  0x62   : > { %1675 = vperm.xlu0 %3252, %v1569_v23   ;;  %v2504_v23 = vor.u32 %v2965_v11, %v2501_v12  ;;  %v2571_v11 = vld [vmem:[%s3494_s20 + $0xc0] sm:$0xf]  ;;  %v2986_v12 = vld [vmem:[%s3494_s20 + $0xcc] sm:$0xf0] }
  0x63   : > { %1153 = vmatmul.bf16.gmra.mxu2 %v2636_v40  ;;  %v2496_v40 = vor.u32 %v2964_v37, %v2493_v39  ;;  %v2540_v37 = vor.u32 %v2978_v35, %v2539_v34  ;;  %v2572_v14 = vor.u32 %v2986_v12, %v2571_v11  ;;  %v2589_v35 = vld [vmem:[%s3494_s20 + $0xf0] sm:$0xf0] }
  0x64   : > { %1242 = vmatmul.bf16.gmra.mxu3 %v2640_v41  ;;  %v2716_v41 = vor.u32 %v3022_v32, %v2715_v31  ;;  %v2971_v31 = vld [vmem:[%s3494_s20 + $0x54] sm:$0xf0]  ;;  %v2969_v32 = vld [vmem:[%s3494_s20 + $0x4c] sm:$0xf] }
  0x65   : > { %1197 = vmatmul.bf16.gmra.mxu1 %v2496_v40  ;;  %1113 = vmatmul.bf16.gmra.mxu0 %v2508_v56  ;;  %v2980_v56 = vld [vmem:[%s3494_s20 + $0xa4] sm:$0xf] }
  0x66   : > { %1680 = vperm.xlu1 %3253, %v1570_v44   ;;  %1625 = vperm.xlu2 %3254, %v1559_v63   ;;  %v2520_v44 = vor.u32 %v2969_v32, %v2517_v33  ;;  %v2990_v32 = vld [vmem:[%s3494_s20 + $0xec] sm:$0xf0]  ;;  %v2988_v33 = vld [vmem:[%s3494_s20 + $0xe4] sm:$0xf] }
  0x6a   : > { %1690 = vperm.xlu0 %3252, %v1572_v30   ;;  %v2515_v30 = vld [vmem:[%s3494_s20 + $0x48] sm:$0xf] }
  0x6b   : > { %v2516_v43 = vor.u32 %v2971_v31, %v2515_v30  ;;  %v2565_v30 = vld [vmem:[%s3494_s20 + $0xb8] sm:$0xf0]  ;;  %v2587_v31 = vld [vmem:[%s3494_s20 + $0xe0] sm:$0xf] }
  0x6c   : > { %v2588_v34 = vor.u32 %v2990_v32, %v2587_v31 }
  0x6e   : > { %1695 = vperm.xlu1 %3253, %v1573_v47   ;;  %1640 = vperm.xlu2 %3254, %v1562_v7   ;;  %v2547_v7 = vld [vmem:[%s3494_s20 + $0x88] sm:$0xf] }
  0x72   : > { %1705 = vperm.xlu0 %3252, %v1575_v45   ;;  %v1571_v45 = vld [vmem:[%s3591_s11 + $0xa0] sm:$0xff] }
  0x73   : > { %1158 = vmatmul.bf16.gmra.mxu2 %v2652_v50  ;;  %v2963_v50 = vld [vmem:[%s3494_s20 + $0x14] sm:$0xf0] }
  0x74   : > { %1247 = vmatmul.bf16.gmra.mxu3 %v2656_v51  ;;  %v2961_v51 = vld [vmem:[%s3494_s20 + $0xc] sm:$0xf]  ;;  %v2484_v59 = vor.u32 %v2963_v50, %v2483_v49  ;;  %v1574_v49 = vld [vmem:[%s3591_s11 + $0xb8] sm:$0xff]  ;;  %v2531_v50 = vld [vmem:[%s3494_s20 + $0x68] sm:$0xf] }
  0x75   : > { %v2488_v60 = vor.u32 %v2961_v51, %v2485_v52  ;;  %1202 = vmatmul.bf16.gmra.mxu1 %v2512_v58  ;;  %1118 = vmatmul.bf16.gmra.mxu0 %v2524_v16  ;;  %v2975_v51 = vld [vmem:[%s3494_s20 + $0x74] sm:$0xf0]  ;;  %v2973_v52 = vld [vmem:[%s3494_s20 + $0x6c] sm:$0xf]  ;;  %v2557_v58 = vld [vmem:[%s3494_s20 + $0xb0] sm:$0xf0] }
  0x76   : > { %1710 = vperm.xlu1 %3253, %v1576_v2   ;;  %1655 = vperm.xlu2 %3254, %v1565_v24   ;;  %v2532_v63 = vor.u32 %v2975_v51, %v2531_v50  ;;  %v2985_v50 = vld [vmem:[%s3494_s20 + $0xcc] sm:$0xf]  ;;  %v2581_v51 = vld [vmem:[%s3494_s20 + $0xd8] sm:$0xf0] }
  0x7a   : > { %1720 = vperm.xlu0 %3252, %v1578_v48  }
  0x7e   : > { %1725 = vperm.xlu1 %3253, %v1579_v8   ;;  %1670 = vperm.xlu2 %3254, %v1568_v29   ;;  %v2979_v8 = vld [vmem:[%s3494_s20 + $0x94] sm:$0xf0]  ;;  %v2981_v29 = vld [vmem:[%s3494_s20 + $0xac] sm:$0xf] }
  0x82   : > { %1735 = vperm.xlu0 %3252, %v1581_v3  }
  0x83   : > { %1163 = vmatmul.bf16.gmra.mxu2 %v2668_v61  ;;  %v1824_v61 = vld [vmem:[%s4144_s5] sm:$0xf] }
  0x84   : > { %1252 = vmatmul.bf16.gmra.mxu3 %v2672_v62  ;;  %v1791_v62 = vld [vmem:[%s4143_s4] sm:$0xf]  ;;  %v1955_v0 = vsel %vm1953_vm0, %v1824_v61, 0  ;;  %v2560_v61 = vor.u32 %v2980_v56, %v2557_v58  ;;  %v2584_v56 = vor.u32 %v2985_v50, %v2581_v51  ;;  %v3373_v58 = vmov 0.0   ;;  %v2999_v50 = vld [vmem:[%s3494_s20 + $0x134] sm:$0xf0] }
  0x85   : > { %v2095_v1 = vsel %vm1953_vm0, %v1791_v62, 0  ;;  %1964 = vmatpush.bf16.msrb.mxu0 %v1955_v0  ;;  %1207 = vmatmul.bf16.gmra.mxu1 %v2528_v20  ;;  %v2536_v0 = vor.u32 %v2973_v52, %v2533_v53  ;;  %v2548_v20 = vor.u32 %v2979_v8, %v2547_v7  ;;  %391 = vst.msk [vmem:[#allocation2] sm:$0xff] %vm390_vm1, %v3373_v58  ;;  %v2997_v51 = vld [vmem:[%s3494_s20 + $0x12c] sm:$0xf] }
  0x86   : > { %2104 = vmatpush.bf16.msrb.mxu1 %v2095_v1  ;;  %1740 = vperm.xlu1 %3253, %v1582_v25   ;;  %v1577_v1 = vld [vmem:[%s3591_s11 + $0xd0] sm:$0xff]  ;;  %392 = vst.msk [vmem:[#allocation2 + $0x8] sm:$0xff] %vm390_vm1, %v3373_v58 }
  0x87   : > { %1123 = vmatmul.bf16.gmra.mxu0 %v2540_v37  ;;  %1685 = vperm.xlu2 %3254, %v1571_v45   ;;  %393 = vst.msk [vmem:[#allocation2 + $0x10] sm:$0xff] %vm390_vm1, %v3373_v58 }
  0x88   : > { %394 = vst.msk [vmem:[#allocation2 + $0x18] sm:$0xff] %vm390_vm1, %v3373_v58 }
  0x89   : > { %395 = vst.msk [vmem:[#allocation2 + $0x20] sm:$0xff] %vm390_vm1, %v3373_v58 }
  0x8a   : > { %396 = vst.msk [vmem:[#allocation2 + $0x28] sm:$0xff] %vm390_vm1, %v3373_v58 }
  0x8b   : > { %397 = vst.msk [vmem:[#allocation2 + $0x30] sm:$0xff] %vm390_vm1, %v3373_v58 }
  0x8c   : > { %398 = vst.msk [vmem:[#allocation2 + $0x38] sm:$0xff] %vm390_vm1, %v3373_v58 }
  0x8d   : > { %399 = vst.msk [vmem:[#allocation2 + $0x40] sm:$0xff] %vm390_vm1, %v3373_v58 }
  0x8e   : > { %400 = vst.msk [vmem:[#allocation2 + $0x48] sm:$0xff] %vm390_vm1, %v3373_v58 }
  0x8f   : > { %1700 = vperm.xlu2 %3254, %v1574_v49   ;;  %v2987_v49 = vld [vmem:[%s3494_s20 + $0xd4] sm:$0xf0]  ;;  %401 = vst.msk [vmem:[#allocation2 + $0x50] sm:$0xff] %vm390_vm1, %v3373_v58 }
  0x90   : > { %402 = vst.msk [vmem:[#allocation2 + $0x58] sm:$0xff] %vm390_vm1, %v3373_v58 }
  0x91   : > { %403 = vst.msk [vmem:[#allocation2 + $0x60] sm:$0xff] %vm390_vm1, %v3373_v58 }
  0x92   : > { %404 = vst.msk [vmem:[#allocation2 + $0x68] sm:$0xff] %vm390_vm1, %v3373_v58 }
  0x93   : > { %1168 = vmatmul.bf16.gmra.mxu2 %v2684_v9  ;;  %v2499_v9 = vld [vmem:[%s3494_s20 + $0x28] sm:$0xf]  ;;  %405 = vst.msk [vmem:[#allocation2 + $0x70] sm:$0xff] %vm390_vm1, %v3373_v58 }
  0x94   : > { %1257 = vmatmul.bf16.gmra.mxu3 %v2688_v10  ;;  %v2967_v10 = vld [vmem:[%s3494_s20 + $0x34] sm:$0xf0]  ;;  %406 = vst.msk [vmem:[#allocation2 + $0x78] sm:$0xff] %vm390_vm1, %v3373_v58 }
  0x95   : > { %v2500_v22 = vor.u32 %v2967_v10, %v2499_v9  ;;  %v2977_v9 = vld [vmem:[%s3494_s20 + $0x8c] sm:$0xf]  ;;  %v2549_v10 = vld [vmem:[%s3494_s20 + $0x98] sm:$0xf0]  ;;  %407 = vst.msk [vmem:[#allocation2 + $0x80] sm:$0xff] %vm390_vm1, %v3373_v58 }
  0x96   : > { %408 = vst.msk [vmem:[#allocation2 + $0x88] sm:$0xff] %vm390_vm1, %v3373_v58 }
  0x97   : > { %1128 = vmatmul.bf16.gmra.mxu0 %v2556_v57  ;;  %1715 = vperm.xlu2 %3254, %v1577_v1   ;;  %v2991_v1 = vld [vmem:[%s3494_s20 + $0xf4] sm:$0xf0]  ;;  %409 = vst.msk [vmem:[#allocation2 + $0x90] sm:$0xff] %vm390_vm1, %v3373_v58 }
  0x98   : > { %410 = vst.msk [vmem:[#allocation2 + $0x98] sm:$0xff] %vm390_vm1, %v3373_v58 }
  0x99   : > { %411 = vst.msk [vmem:[#allocation2 + $0xa0] sm:$0xff] %vm390_vm1, %v3373_v58 }
  0x9a   : > { %412 = vst.msk [vmem:[#allocation2 + $0xa8] sm:$0xff] %vm390_vm1, %v3373_v58 }
  0x9b   : > { %413 = vst.msk [vmem:[#allocation2 + $0xb0] sm:$0xff] %vm390_vm1, %v3373_v58 }
  0x9c   : > { %414 = vst.msk [vmem:[#allocation2 + $0xb8] sm:$0xff] %vm390_vm1, %v3373_v58 }
  0x9d   : > { %415 = vst.msk [vmem:[#allocation2 + $0xc0] sm:$0xff] %vm390_vm1, %v3373_v58 }
  0x9e   : > { %416 = vst.msk [vmem:[#allocation2 + $0xc8] sm:$0xff] %vm390_vm1, %v3373_v58 }
  0x9f   : > { %417 = vst.msk [vmem:[#allocation2 + $0xd0] sm:$0xff] %vm390_vm1, %v3373_v58 }
  0xa0   : > { %418 = vst.msk [vmem:[#allocation2 + $0xd8] sm:$0xff] %vm390_vm1, %v3373_v58 }
  0xa1   : > { %419 = vst.msk [vmem:[#allocation2 + $0xe0] sm:$0xff] %vm390_vm1, %v3373_v58 }
  0xa2   : > { %420 = vst.msk [vmem:[#allocation2 + $0xe8] sm:$0xff] %vm390_vm1, %v3373_v58 }
  0xa3   : > { %1173 = vmatmul.bf16.gmra.mxu2 %v2700_v27  ;;  %421 = vst.msk [vmem:[#allocation2 + $0xf0] sm:$0xff] %vm390_vm1, %v3373_v58 }
  0xa4   : > { %1262 = vmatmul.bf16.gmra.mxu3 %v2704_v28  ;;  %422 = vst.msk [vmem:[#allocation2 + $0xf8] sm:$0xff] %vm390_vm1, %v3373_v58 }
  0xa7   : > { %1133 = vmatmul.bf16.gmra.mxu0 %v2572_v14 }
  0xb3   : > { %1178 = vmatmul.bf16.gmra.mxu2 %v2716_v41  ;;  %v2544_v41 = vor.u32 %v2976_v36, %v2541_v38  ;;  %v2592_v38 = vor.u32 %v2988_v33, %v2589_v35 }
  0xb4   : > { %1267 = vmatmul.bf16.gmra.mxu3 %v2720_v42 }
  0xb5   : > { %1212 = vmatmul.bf16.gmra.mxu1 %v2544_v41  ;;  %v2568_v41 = vor.u32 %v2981_v29, %v2565_v30 }
  0xb7   : > { %1138 = vmatmul.bf16.gmra.mxu0 %v2588_v34 }
  0xc3   : > { %1281 = vmatmul.bf16.vlgmr.msrb.gmra.mxu2 %v2484_v59  ;;  %v3761_v57 = vpop.f32.mrf.mxu1 }
  0xc4   : > { %1370 = vmatmul.bf16.vlgmr.msrb.gmra.mxu3 %v2488_v60 }
  0xc5   : > { %1217 = vmatmul.bf16.gmra.mxu1 %v2560_v61 }
  0xc6   : > { %v1144_v4 = vpop.f32.mrf.mxu2 }
  0xc7   : > { %v1233_v5 = vpop.f32.mrf.mxu3 }
  0xc8   : > { %v3682_v6 = vadd.f32 %v1233_v5, %v1144_v4  ;;  %v1580_v5 = vld [vmem:[%s3591_s11 + $0xe8] sm:$0xff]  ;;  %s2470_s11 = sshll.u32 %s4163_s23, 2 }
  0xc9   : > { %1730 = vperm.xlu2 %3254, %v1580_v5   ;;  %s3815_s9 = scalar_lea.vmem %s4141_s2, %s2470_s11  ;;  %s3300_s11 = sshra.s32 %s2334_s10, 4  ;;  %s3301_s11 = int_to_ptr.hbm [resolvable:$true] %s3300_s11 }
  0xca   : > { %s3302_s18 = scalar_lea.hbm %s3301_s11, 128  ;;  %p3307_p8 = scmp.lt.s32.totalorder %s3301_s11, %s4146_s7 }
  0xcb   : > { %v3791_v5 = vpop.f32.mrf.mxu1  ;;  %p3303_p5 = scmp.ne.s32.totalorder %s3301_s11, %s3302_s18 }
  0xcd   : > { %p3304_p6 = pnand %p3303_p5, %p3467_p9 }
  0xce   : > { %v1146_v18 = vpop.f32.mrf.mxu2 }
  0xcf   : > { %v1235_v19 = vpop.f32.mrf.mxu3  ;;  %p3305_p7 = pneg %p3304_p6 }
  0xd0   : > { %v3694_v21 = vadd.f32 %v1235_v19, %v1146_v18  ;;  %v2576_v18 = vor.u32 %v2984_v13, %v2573_v15 }
  0xd3   : > { %1286 = vmatmul.bf16.gmra.mxu2 %v2500_v22  ;;  %v2552_v22 = vor.u32 %v2977_v9, %v2549_v10 }
  0xd4   : > { %1375 = vmatmul.bf16.gmra.mxu3 %v2504_v23 }
  0xd5   : > { %1222 = vmatmul.bf16.gmra.mxu1 %v2576_v18  ;;  %v3056_v18 = vld [vmem:[%s3815_s9] sm:$0xff] }
  0xd6   : > { %v1149_v26 = vpop.f32.mrf.mxu2  ;;  %2921 = vmatmul.msk.bf16.vlgmr.msrb.gmra.mxu0 %vm390_vm1, %v3056_v18  ;;  %v3003_v18 = vld [vmem:[%s3494_s20 + $0x154] sm:$0xf0] }
  0xd7   : > { %v1238_v27 = vpop.f32.mrf.mxu3 }
  0xd8   : > { %v3698_v28 = vadd.f32 %v1238_v27, %v1149_v26  ;;  %v2563_v26 = vld [vmem:[%s3494_s20 + $0xa8] sm:$0xf]  ;;  %v2983_v27 = vld [vmem:[%s3494_s20 + $0xb4] sm:$0xf0] }
  0xde   : > { %v1151_v39 = vpop.f32.mrf.mxu2 }
  0xdf   : > { %v1240_v40 = vpop.f32.mrf.mxu3 }
  0xe0   : > { %v3709_v42 = vadd.f32 %v1240_v40, %v1151_v39  ;;  %v2564_v40 = vor.u32 %v2983_v27, %v2563_v26 }
  0xe3   : > { %1291 = vmatmul.bf16.gmra.mxu2 %v2516_v43 }
  0xe4   : > { %1380 = vmatmul.bf16.gmra.mxu3 %v2520_v44 }
  0xe5   : > { %1227 = vmatmul.bf16.gmra.mxu1 %v2592_v38  ;;  %v3057_v38 = vld [vmem:[%s3815_s9 + $0x8] sm:$0xff] }
  0xe6   : > { %v1154_v46 = vpop.f32.mrf.mxu2  ;;  %2922 = vmatmul.msk.bf16.gmra.mxu0 %vm390_vm1, %v3057_v38 }
  0xe7   : > { %v1243_v47 = vpop.f32.mrf.mxu3 }
  0xe8   : > { %v3712_v48 = vadd.f32 %v1243_v47, %v1154_v46  ;;  %v3753_v46 = vpop.f32.mrf.mxu0  ;;  %v2579_v47 = vld [vmem:[%s3494_s20 + $0xc8] sm:$0xf] }
  0xe9   : > { %v2580_v55 = vor.u32 %v2987_v49, %v2579_v47  ;;  %v1194_v34 = vadd.f32 %v3761_v57, %v3753_v46 }
  0xee   : > { %v1156_v59 = vpop.f32.mrf.mxu2 }
  0xef   : > { %v1245_v60 = vpop.f32.mrf.mxu3 }
  0xf0   : > { %v3723_v62 = vadd.f32 %v1245_v60, %v1156_v59  ;;  %v3765_v59 = vpop.f32.mrf.mxu0 }
  0xf1   : > { %v1196_v46 = vadd.f32 %v3791_v5, %v3765_v59 }
  0xf3   : > { %1296 = vmatmul.bf16.gmra.mxu2 %v2532_v63 }
  0xf4   : > { %1385 = vmatmul.bf16.gmra.mxu3 %v2536_v0  ;;  %v2595_v0 = vld [vmem:[%s3494_s20 + $0xe8] sm:$0xf] }
  0xf5   : > { %v2596_v11 = vor.u32 %v2991_v1, %v2595_v0  ;;  %v1586_v0 = vpop.permute.xlu0 %1585 }
  0xf6   : > { %v1159_v2 = vpop.f32.mrf.mxu2 }
  0xf7   : > { %v1248_v3 = vpop.f32.mrf.mxu3 }
  0xf8   : > { %v3726_v4 = vadd.f32 %v1248_v3, %v1159_v2  ;;  %v2989_v2 = vld [vmem:[%s3494_s20 + $0xec] sm:$0xf]  ;;  %v2597_v3 = vld [vmem:[%s3494_s20 + $0xf8] sm:$0xf0]  ;;  %v3795_v7 = vpop.f32.mrf.mxu0 }
  0xf9   : > { %v2600_v12 = vor.u32 %v2989_v2, %v2597_v3 }
  0xfe   : > { %v1161_v16 = vpop.f32.mrf.mxu2 }
  0xff   : > { %v1250_v17 = vpop.f32.mrf.mxu3 }
 0x100   : > { %v3737_v19 = vadd.f32 %v1250_v17, %v1161_v16  ;;  %v1198_v16 = vpop.f32.mrf.mxu1  ;;  %v3827_v17 = vpop.f32.mrf.mxu0 }
 0x101   : > { %v1199_v1 = vadd.f32 %v1198_v16, %v3795_v7  ;;  %v2643_v16 = vld [vmem:[%s3494_s20 + $0x148] sm:$0xf] }
 0x103   : > { %1301 = vmatmul.bf16.gmra.mxu2 %v2548_v20  ;;  %v2611_v20 = vld [vmem:[%s3494_s20 + $0x108] sm:$0xf] }
 0x104   : > { %1390 = vmatmul.bf16.gmra.mxu3 %v2552_v22  ;;  %v2995_v22 = vld [vmem:[%s3494_s20 + $0x114] sm:$0xf0] }
 0x105   : > { %v2612_v30 = vor.u32 %v2995_v22, %v2611_v20  ;;  %v1591_v20 = vpop.permute.xlu0 %1590 }
 0x106   : > { %v1164_v23 = vpop.f32.mrf.mxu2 }
 0x107   : > { %v1253_v24 = vpop.f32.mrf.mxu3 }
 0x108   : > { %v3739_v25 = vadd.f32 %v1253_v24, %v1164_v23  ;;  %v2993_v23 = vld [vmem:[%s3494_s20 + $0x10c] sm:$0xf]  ;;  %v2613_v24 = vld [vmem:[%s3494_s20 + $0x118] sm:$0xf0]  ;;  %v1200_v32 = vpop.f32.mrf.mxu1  ;;  %v3857_v33 = vpop.f32.mrf.mxu0 }
 0x109   : > { %v2616_v31 = vor.u32 %v2993_v23, %v2613_v24  ;;  %v3001_v23 = vld [vmem:[%s3494_s20 + $0x14c] sm:$0xf]  ;;  %v2645_v24 = vld [vmem:[%s3494_s20 + $0x158] sm:$0xf0] }
 0x10a   : > { %v2648_v38 = vor.u32 %v3001_v23, %v2645_v24  ;;  %v1606_v23 = vpop.permute.xlu2 %1605 }
 0x10e   : > { %v1166_v36 = vpop.f32.mrf.mxu2 }
 0x10f   : > { %v1255_v37 = vpop.f32.mrf.mxu3 }
 0x110   : > { %v3749_v39 = vadd.f32 %v1255_v37, %v1166_v36  ;;  %v1203_v47 = vpop.f32.mrf.mxu1  ;;  %v3866_v49 = vpop.f32.mrf.mxu0 }
 0x113   : > { %1306 = vmatmul.bf16.gmra.mxu2 %v2564_v40  ;;  %v423_v40 = vld [vmem:[#allocation2] sm:$0xff] }
 0x114   : > { %1395 = vmatmul.bf16.gmra.mxu3 %v2568_v41 }
 0x116   : > { %v1169_v43 = vpop.f32.mrf.mxu2 }
 0x117   : > { %v1258_v44 = vpop.f32.mrf.mxu3 }
 0x118   : > { %v3751_v45 = vadd.f32 %v1258_v44, %v1169_v43  ;;  %v2627_v44 = vld [vmem:[%s3494_s20 + $0x128] sm:$0xf]  ;;  %v1205_v59 = vpop.f32.mrf.mxu1  ;;  %v3876_v3 = vpop.f32.mrf.mxu0 }
 0x119   : > { %v2628_v57 = vor.u32 %v2999_v50, %v2627_v44  ;;  %v1596_v50 = vpop.permute.xlu1 %1595 }
 0x11e   : > { %v1171_v52 = vpop.f32.mrf.mxu2 }
 0x11f   : > { %v1260_v53 = vpop.f32.mrf.mxu3 }
 0x120   : > { %v3759_v54 = vadd.f32 %v1260_v53, %v1171_v52  ;;  %v2629_v52 = vld [vmem:[%s3494_s20 + $0x138] sm:$0xf0] }
 0x121   : > { %v2632_v58 = vor.u32 %v2997_v51, %v2629_v52 }
 0x123   : > { %1311 = vmatmul.bf16.gmra.mxu2 %v2580_v55 }
 0x124   : > { %1400 = vmatmul.bf16.gmra.mxu3 %v2584_v56 }
 0x126   : > { %v1174_v60 = vpop.f32.mrf.mxu2 }
 0x127   : > { %v1263_v61 = vpop.f32.mrf.mxu3 }
 0x128   : > { %v3773_v63 = vadd.f32 %v1263_v61, %v1174_v60  ;;  %v424_v60 = vld [vmem:[#allocation2 + $0x8] sm:$0xff] }
 0x12e   : > { %v1176_v8 = vpop.f32.mrf.mxu2 }
 0x12f   : > { %v1265_v9 = vpop.f32.mrf.mxu3 }
 0x130   : > { %v3799_v10 = vadd.f32 %v1265_v9, %v1176_v8 }
 0x133   : > { %1316 = vmatmul.bf16.gmra.mxu2 %v2596_v11  ;;  %v3058_v11 = vld [vmem:[%s3815_s9 + $0x10] sm:$0xff] }
 0x134   : > { %1405 = vmatmul.bf16.gmra.mxu3 %v2600_v12  ;;  %v425_v12 = vld [vmem:[#allocation2 + $0x10] sm:$0xff]  ;;  %2923 = vmatmul.msk.bf16.gmra.mxu0 %vm390_vm1, %v3058_v11 }
 0x136   : > { %v1179_v13 = vpop.f32.mrf.mxu2 }
 0x137   : > { %v1268_v14 = vpop.f32.mrf.mxu3 }
 0x138   : > { %v3823_v15 = vadd.f32 %v1268_v14, %v1179_v13 }
 0x13e   : > { %v1181_v26 = vpop.f32.mrf.mxu2 }
 0x13f   : > { %v1270_v27 = vpop.f32.mrf.mxu3 }
 0x140   : > { %v3849_v29 = vadd.f32 %v1270_v27, %v1181_v26  ;;  %v1201_v26 = vadd.f32 %v1200_v32, %v3827_v17  ;;  %v1204_v17 = vadd.f32 %v1203_v47, %v3857_v33 }
 0x143   : > { %1321 = vmatmul.bf16.gmra.mxu2 %v2612_v30 }
 0x144   : > { %1410 = vmatmul.bf16.gmra.mxu3 %v2616_v31 }
 0x146   : > { %v1282_v35 = vpop.f32.mrf.mxu2 }
 0x147   : > { %v1371_v36 = vpop.f32.mrf.mxu3  ;;  %v1283_v37 = vadd.f32 %v1282_v35, %v1194_v34 }
 0x149   : > { %v1372_v41 = vadd.f32 %v1371_v36, %v1283_v37  ;;  %v2644_v37 = vor.u32 %v3003_v18, %v2643_v16 }
 0x14b   : > { %v1451_v43 = vadd.f32 %v1372_v41, %v423_v40  ;;  %v1208_v40 = vpop.f32.mrf.mxu1  ;;  %v3886_v41 = vpop.f32.mrf.mxu0 }
 0x14c   : > { %v1209_v24 = vadd.f32 %v1208_v40, %v3876_v3  ;;  %v3011_v40 = vld [vmem:[%s3494_s20 + $0x194] sm:$0xf0] }
 0x14d   : > { %1484 = vst.msk [vmem:[#allocation2] sm:$0xff] %vm390_vm1, %v1451_v43  ;;  %v426_v43 = vld [vmem:[#allocation2 + $0x18] sm:$0xff] }
 0x14e   : > { %v1284_v53 = vpop.f32.mrf.mxu2 }
 0x14f   : > { %v1373_v55 = vpop.f32.mrf.mxu3  ;;  %v1285_v56 = vadd.f32 %v1284_v53, %v1196_v46  ;;  %v3059_v53 = vld [vmem:[%s3815_s9 + $0x18] sm:$0xff] }
 0x150   : > { %2924 = vmatmul.msk.bf16.gmra.mxu0 %vm390_vm1, %v3059_v53 }
 0x151   : > { %v1374_v61 = vadd.f32 %v1373_v55, %v1285_v56  ;;  %v427_v55 = vld [vmem:[#allocation2 + $0x20] sm:$0xff] }
 0x153   : > { %v1452_v2 = vadd.f32 %v1374_v61, %v424_v60  ;;  %1326 = vmatmul.bf16.gmra.mxu2 %v2628_v57  ;;  %v1210_v57 = vpop.f32.mrf.mxu1  ;;  %v2659_v60 = vld [vmem:[%s3494_s20 + $0x168] sm:$0xf]  ;;  %v3007_v61 = vld [vmem:[%s3494_s20 + $0x174] sm:$0xf0] }
 0x154   : > { %1415 = vmatmul.bf16.gmra.mxu3 %v2632_v58  ;;  %v1519_v7 = vld [vmem:[#allocation2] sm:$0xff]  ;;  %v1124_v58 = vpop.f32.mrf.mxu0  ;;  %v2660_v16 = vor.u32 %v3007_v61, %v2659_v60 }
 0x155   : > { %1485 = vst.msk [vmem:[#allocation2 + $0x8] sm:$0xff] %vm390_vm1, %v1452_v2  ;;  %v1743_v27 = vmul.f32 %v1586_v0, %v1519_v7  ;;  %v1601_v0 = vpop.permute.xlu1 %1600  ;;  %v3005_v2 = vld [vmem:[%s3494_s20 + $0x16c] sm:$0xf] }
 0x156   : > { %v1287_v5 = vpop.f32.mrf.mxu2 }
 0x157   : > { %v1376_v8 = vpop.f32.mrf.mxu3  ;;  %v1288_v9 = vadd.f32 %v1287_v5, %v1199_v1  ;;  %v2661_v5 = vld [vmem:[%s3494_s20 + $0x178] sm:$0xf0] }
 0x158   : > { %v2664_v18 = vor.u32 %v3005_v2, %v2661_v5 }
 0x159   : > { %v1377_v13 = vadd.f32 %v1376_v8, %v1288_v9  ;;  %v1206_v8 = vadd.f32 %v1205_v59, %v3866_v49 }
 0x15b   : > { %v1453_v14 = vadd.f32 %v1377_v13, %v425_v12  ;;  %v1213_v59 = vpop.f32.mrf.mxu1 }
 0x15c   : > { %v1520_v22 = vld [vmem:[#allocation2 + $0x8] sm:$0xff]  ;;  %v1214_v2 = vadd.f32 %v1213_v59, %v1124_v58 }
 0x15d   : > { %1486 = vst.msk [vmem:[#allocation2 + $0x10] sm:$0xff] %vm390_vm1, %v1453_v14  ;;  %v1744_v30 = vmul.f32 %v1591_v20, %v1520_v22  ;;  %v428_v20 = vld [vmem:[#allocation2 + $0x28] sm:$0xff] }
 0x15e   : > { %v1289_v31 = vpop.f32.mrf.mxu2 }
 0x15f   : > { %v1378_v34 = vpop.f32.mrf.mxu3  ;;  %v1290_v35 = vadd.f32 %v1289_v31, %v1201_v26  ;;  %v1775_v36 = vpack.c.bf16 %v1744_v30, %v1743_v27  ;;  %v1126_v26 = vpop.f32.mrf.mxu0 }
 0x161   : > { %v1379_v44 = vadd.f32 %v1378_v34, %v1290_v35  ;;  %2937 = vmatmul.msk.bf16.vlgmr.msrb.gmra.mxu1 %vm390_vm1, %v1775_v36  ;;  %v3060_v34 = vld [vmem:[%s3815_s9 + $0x20] sm:$0xff]  ;;  %v429_v35 = vld [vmem:[#allocation2 + $0x30] sm:$0xff] }
 0x162   : > { %2925 = vmatmul.msk.bf16.gmra.mxu0 %vm390_vm1, %v3060_v34 }
 0x163   : > { %v1454_v32 = vadd.f32 %v1379_v44, %v426_v43  ;;  %1331 = vmatmul.bf16.gmra.mxu2 %v2644_v37  ;;  %v1611_v43 = vpop.permute.xlu2 %1610 }
 0x164   : > { %1420 = vmatmul.bf16.gmra.mxu3 %v2648_v38  ;;  %v1521_v33 = vld [vmem:[#allocation2 + $0x10] sm:$0xff]  ;;  %v2675_v38 = vld [vmem:[%s3494_s20 + $0x188] sm:$0xf] }
 0x165   : > { %1487 = vst.msk [vmem:[#allocation2 + $0x18] sm:$0xff] %vm390_vm1, %v1454_v32  ;;  %v1745_v9 = vmul.f32 %v1596_v50, %v1521_v33  ;;  %v3009_v50 = vld [vmem:[%s3494_s20 + $0x18c] sm:$0xf]  ;;  %v1211_v32 = vadd.f32 %v1210_v57, %v3886_v41  ;;  %v2676_v60 = vor.u32 %v3011_v40, %v2675_v38 }
 0x166   : > { %v1292_v51 = vpop.f32.mrf.mxu2  ;;  %v432_v38 = vld [vmem:[#allocation2 + $0x48] sm:$0xff] }
 0x167   : > { %v1381_v52 = vpop.f32.mrf.mxu3  ;;  %v1293_v46 = vadd.f32 %v1292_v51, %v1204_v17  ;;  %v2677_v17 = vld [vmem:[%s3494_s20 + $0x198] sm:$0xf0]  ;;  %v1129_v53 = vpop.f32.mrf.mxu0 }
 0x168   : > { %v2680_v61 = vor.u32 %v3009_v50, %v2677_v17 }
 0x169   : > { %v1382_v56 = vadd.f32 %v1381_v52, %v1293_v46  ;;  %v1215_v46 = vpop.f32.mrf.mxu1 }
 0x16a   : > { %v1216_v59 = vadd.f32 %v1215_v46, %v1126_v26  ;;  %v433_v46 = vld [vmem:[#allocation2 + $0x50] sm:$0xff] }
 0x16b   : > { %v1455_v47 = vadd.f32 %v1382_v56, %v427_v55 }
 0x16c   : > { %v1522_v1 = vld [vmem:[#allocation2 + $0x18] sm:$0xff] }
 0x16d   : > { %1488 = vst.msk [vmem:[#allocation2 + $0x20] sm:$0xff] %vm390_vm1, %v1455_v47  ;;  %v1746_v11 = vmul.f32 %v1601_v0, %v1522_v1  ;;  %v430_v0 = vld [vmem:[#allocation2 + $0x38] sm:$0xff] }
 0x16e   : > { %v1294_v12 = vpop.f32.mrf.mxu2 }
 0x16f   : > { %v1383_v13 = vpop.f32.mrf.mxu3  ;;  %v1295_v7 = vadd.f32 %v1294_v12, %v1206_v8  ;;  %v1776_v14 = vpack.c.bf16 %v1746_v11, %v1745_v9  ;;  %v1131_v11 = vpop.f32.mrf.mxu0  ;;  %v3061_v12 = vld [vmem:[%s3815_s9 + $0x28] sm:$0xff] }
 0x171   : > { %v1384_v22 = vadd.f32 %v1383_v13, %v1295_v7  ;;  %2938 = vmatmul.msk.bf16.gmra.mxu1 %vm390_vm1, %v1776_v14  ;;  %v1218_v9 = vpop.f32.mrf.mxu1  ;;  %v431_v13 = vld [vmem:[#allocation2 + $0x40] sm:$0xff] }
 0x172   : > { %2926 = vmatmul.msk.bf16.gmra.mxu0 %vm390_vm1, %v3061_v12  ;;  %v1219_v50 = vadd.f32 %v1218_v9, %v1129_v53  ;;  %v2707_v53 = vld [vmem:[%s3494_s20 + $0x1c8] sm:$0xf] }
 0x173   : > { %v1456_v49 = vadd.f32 %v1384_v22, %v428_v20  ;;  %1336 = vmatmul.bf16.gmra.mxu2 %v2660_v16  ;;  %v2691_v16 = vld [vmem:[%s3494_s20 + $0x1a8] sm:$0xf]  ;;  %v1616_v20 = vpop.permute.xlu0 %1615  ;;  %v1621_v22 = vpop.permute.xlu1 %1620 }
 0x174   : > { %1425 = vmatmul.bf16.gmra.mxu3 %v2664_v18  ;;  %v1523_v3 = vld [vmem:[#allocation2 + $0x20] sm:$0xff]  ;;  %v3015_v18 = vld [vmem:[%s3494_s20 + $0x1b4] sm:$0xf0] }
 0x175   : > { %1489 = vst.msk [vmem:[#allocation2 + $0x28] sm:$0xff] %vm390_vm1, %v1456_v49  ;;  %v1747_v51 = vmul.f32 %v1606_v23, %v1523_v3  ;;  %v2693_v49 = vld [vmem:[%s3494_s20 + $0x1b8] sm:$0xf0]  ;;  %v2692_v3 = vor.u32 %v3015_v18, %v2691_v16 }
 0x176   : > { %v1297_v27 = vpop.f32.mrf.mxu2  ;;  %v434_v18 = vld [vmem:[#allocation2 + $0x58] sm:$0xff] }
 0x177   : > { %v1386_v30 = vpop.f32.mrf.mxu3  ;;  %v1298_v31 = vadd.f32 %v1297_v27, %v1209_v24  ;;  %v3013_v24 = vld [vmem:[%s3494_s20 + $0x1ac] sm:$0xf] }
 0x179   : > { %v1387_v36 = vadd.f32 %v1386_v30, %v1298_v31 }
 0x17b   : > { %v1457_v37 = vadd.f32 %v1387_v36, %v429_v35 }
 0x17c   : > { %v1524_v44 = vld [vmem:[#allocation2 + $0x28] sm:$0xff] }
 0x17d   : > { %1490 = vst.msk [vmem:[#allocation2 + $0x30] sm:$0xff] %vm390_vm1, %v1457_v37  ;;  %v1748_v52 = vmul.f32 %v1611_v43, %v1524_v44  ;;  %v2696_v37 = vor.u32 %v3013_v24, %v2693_v49  ;;  %v1220_v43 = vpop.f32.mrf.mxu1  ;;  %v1134_v44 = vpop.f32.mrf.mxu0 }
 0x17e   : > { %v1299_v55 = vpop.f32.mrf.mxu2 }
 0x17f   : > { %v1388_v56 = vpop.f32.mrf.mxu3  ;;  %v1300_v33 = vadd.f32 %v1299_v55, %v1211_v32  ;;  %v1777_v47 = vpack.c.bf16 %v1748_v52, %v1747_v51  ;;  %v3062_v52 = vld [vmem:[%s3815_s9 + $0x30] sm:$0xff] }
 0x181   : > { %v1389_v1 = vadd.f32 %v1388_v56, %v1300_v33  ;;  %2939 = vmatmul.msk.bf16.gmra.mxu1 %vm390_vm1, %v1777_v47 }
 0x182   : > { %2927 = vmatmul.msk.bf16.gmra.mxu0 %vm390_vm1, %v3062_v52 }
 0x183   : > { %v1458_v41 = vadd.f32 %v1389_v1, %v430_v0  ;;  %1341 = vmatmul.bf16.gmra.mxu2 %v2676_v60  ;;  %v3019_v60 = vld [vmem:[%s3494_s20 + $0x1d4] sm:$0xf0]  ;;  %v1631_v0 = vpop.permute.xlu0 %1630  ;;  %v1626_v1 = vpop.permute.xlu2 %1625 }
 0x184   : > { %1430 = vmatmul.bf16.gmra.mxu3 %v2680_v61  ;;  %v1525_v58 = vld [vmem:[#allocation2 + $0x30] sm:$0xff] }
 0x185   : > { %1491 = vst.msk [vmem:[#allocation2 + $0x38] sm:$0xff] %vm390_vm1, %v1458_v41  ;;  %v1749_v27 = vmul.f32 %v1616_v20, %v1525_v58  ;;  %v1223_v47 = vpop.f32.mrf.mxu1  ;;  %v1136_v61 = vpop.f32.mrf.mxu0  ;;  %v3017_v41 = vld [vmem:[%s3494_s20 + $0x1cc] sm:$0xf] }
 0x186   : > { %v1302_v57 = vpop.f32.mrf.mxu2 }
 0x187   : > { %v1391_v5 = vpop.f32.mrf.mxu3  ;;  %v1303_v8 = vadd.f32 %v1302_v57, %v1214_v2  ;;  %v2709_v57 = vld [vmem:[%s3494_s20 + $0x1d8] sm:$0xf0] }
 0x188   : > { %v2712_v16 = vor.u32 %v3017_v41, %v2709_v57 }
 0x189   : > { %v1392_v7 = vadd.f32 %v1391_v5, %v1303_v8  ;;  %v1221_v5 = vadd.f32 %v1220_v43, %v1131_v11 }
 0x18b   : > { %v1459_v14 = vadd.f32 %v1392_v7, %v431_v13 }
 0x18c   : > { %v1526_v23 = vld [vmem:[#allocation2 + $0x38] sm:$0xff] }
 0x18d   : > { %1492 = vst.msk [vmem:[#allocation2 + $0x40] sm:$0xff] %vm390_vm1, %v1459_v14  ;;  %v1750_v30 = vmul.f32 %v1621_v22, %v1526_v23  ;;  %v2708_v14 = vor.u32 %v3019_v60, %v2707_v53  ;;  %v1224_v22 = vadd.f32 %v1223_v47, %v1134_v44  ;;  %v1225_v11 = vpop.f32.mrf.mxu1  ;;  %v1139_v24 = vpop.f32.mrf.mxu0  ;;  %v3021_v44 = vld [vmem:[%s3494_s20 + $0x1ec] sm:$0xf] }
 0x18e   : > { %v1304_v31 = vpop.f32.mrf.mxu2  ;;  %v436_v60 = vld [vmem:[#allocation2 + $0x68] sm:$0xff] }
 0x18f   : > { %v1393_v34 = vpop.f32.mrf.mxu3  ;;  %v1305_v35 = vadd.f32 %v1304_v31, %v1216_v59  ;;  %v1778_v36 = vpack.c.bf16 %v1750_v30, %v1749_v27  ;;  %v3063_v30 = vld [vmem:[%s3815_s9 + $0x38] sm:$0xff]  ;;  %v435_v31 = vld [vmem:[#allocation2 + $0x60] sm:$0xff] }
 0x191   : > { %v1394_v40 = vadd.f32 %v1393_v34, %v1305_v35  ;;  %2940 = vmatmul.msk.bf16.gmra.mxu1 %vm390_vm1, %v1778_v36 }
 0x192   : > { %2928 = vmatmul.msk.bf16.gmra.mxu0 %vm390_vm1, %v3063_v30  ;;  %v438_v30 = vld [vmem:[#allocation2 + $0x78] sm:$0xff] }
 0x193   : > { %v1460_v26 = vadd.f32 %v1394_v40, %v432_v38  ;;  %1346 = vmatmul.bf16.gmra.mxu2 %v2692_v3  ;;  %v2723_v3 = vld [vmem:[%s3494_s20 + $0x1e8] sm:$0xf]  ;;  %v1636_v38 = vpop.permute.xlu1 %1635  ;;  %v1641_v40 = vpop.permute.xlu2 %1640 }
 0x194   : > { %1435 = vmatmul.bf16.gmra.mxu3 %v2696_v37  ;;  %v1527_v56 = vld [vmem:[#allocation2 + $0x40] sm:$0xff]  ;;  %v3023_v37 = vld [vmem:[%s3494_s20 + $0x1f4] sm:$0xf0] }
 0x195   : > { %1493 = vst.msk [vmem:[#allocation2 + $0x48] sm:$0xff] %vm390_vm1, %v1460_v26  ;;  %v1751_v8 = vmul.f32 %v1626_v1, %v1527_v56  ;;  %v1226_v26 = vadd.f32 %v1225_v11, %v1136_v61  ;;  %v2724_v56 = vor.u32 %v3023_v37, %v2723_v3  ;;  %v1141_v47 = vpop.f32.mrf.mxu0  ;;  %v1228_v53 = vpop.f32.mrf.mxu1 }
 0x196   : > { %v1307_v17 = vpop.f32.mrf.mxu2  ;;  %v1229_v1 = vadd.f32 %v1228_v53, %v1139_v24 }
 0x197   : > { %v1396_v32 = vpop.f32.mrf.mxu3  ;;  %v1308_v51 = vadd.f32 %v1307_v17, %v1219_v50  ;;  %v2725_v50 = vld [vmem:[%s3494_s20 + $0x1f8] sm:$0xf0]  ;;  %s3306_s20 = scalar_lea.hbm %s4146_s7, 256 }
 0x198   : > { %p3308_p10 = scmp.lt.s32.totalorder %s3306_s20, %s3302_s18 }
 0x199   : > { %v1397_v55 = vadd.f32 %v1396_v32, %v1308_v51 }
 0x19a   : > { %p3309_p13 = por %p3308_p10, %p3307_p8 }
 0x19b   : > { %v1461_v33 = vadd.f32 %v1397_v55, %v433_v46 }
 0x19c   : > { %v1528_v2 = vld [vmem:[#allocation2 + $0x48] sm:$0xff]  ;;  %p3310_p0 = pnand %p3309_p13, %p3305_p7 }
 0x19d   : > { %1494 = vst.msk [vmem:[#allocation2 + $0x50] sm:$0xff] %vm390_vm1, %v1461_v33  ;;  %v1752_v9 = vmul.f32 %v1631_v0, %v1528_v2  ;;  %v2728_v33 = vor.u32 %v3021_v44, %v2725_v50 }
 0x19e   : > { %v1309_v12 = vpop.f32.mrf.mxu2 }
 0x19f   : > { %v1398_v13 = vpop.f32.mrf.mxu3  ;;  %v1310_v7 = vadd.f32 %v1309_v12, %v1221_v5  ;;  %v1779_v58 = vpack.c.bf16 %v1752_v9, %v1751_v8  ;;  %v3939_v5 = vpop.f32.mrf.mxu0  ;;  %v3064_v8 = vld [vmem:[%s3815_s9 + $0x40] sm:$0xff]  ;;  %v437_v9 = vld [vmem:[#allocation2 + $0x70] sm:$0xff] }
 0x1a1   : > { %v1399_v20 = vadd.f32 %v1398_v13, %v1310_v7  ;;  %2941 = vmatmul.msk.bf16.gmra.mxu1 %vm390_vm1, %v1779_v58  ;;  %v1230_v13 = vpop.f32.mrf.mxu1 }
 0x1a2   : > { %2929 = vmatmul.msk.bf16.gmra.mxu0 %vm390_vm1, %v3064_v8 }
 0x1a3   : > { %v1462_v23 = vadd.f32 %v1399_v20, %v434_v18  ;;  %1351 = vmatmul.bf16.gmra.mxu2 %v2708_v14  ;;  %v1646_v14 = vpop.permute.xlu0 %1645  ;;  %v1231_v20 = vadd.f32 %v1230_v13, %v1141_v47  ;;  %v440_v47 = vld [vmem:[#allocation2 + $0x88] sm:$0xff] }
 0x1a4   : > { %1440 = vmatmul.bf16.gmra.mxu3 %v2712_v16  ;;  %v1529_v35 = vld [vmem:[#allocation2 + $0x50] sm:$0xff]  ;;  %v1651_v16 = vpop.permute.xlu1 %1650 }
 0x1a5   : > { %1495 = vst.msk [vmem:[#allocation2 + $0x58] sm:$0xff] %vm390_vm1, %v1462_v23  ;;  %v1753_v17 = vmul.f32 %v1636_v38, %v1529_v35  ;;  %v439_v38 = vld [vmem:[#allocation2 + $0x80] sm:$0xff] }
 0x1a6   : > { %v1312_v49 = vpop.f32.mrf.mxu2 }
 0x1a7   : > { %v1401_v59 = vpop.f32.mrf.mxu3  ;;  %v1313_v27 = vadd.f32 %v1312_v49, %v1224_v22 }
 0x1a9   : > { %v1402_v34 = vadd.f32 %v1401_v59, %v1313_v27  ;;  %v3944_v27 = vpop.f32.mrf.mxu0 }
 0x1ab   : > { %v1463_v36 = vadd.f32 %v1402_v34, %v435_v31 }
 0x1ac   : > { %v1530_v43 = vld [vmem:[#allocation2 + $0x58] sm:$0xff] }
 0x1ad   : > { %1496 = vst.msk [vmem:[#allocation2 + $0x60] sm:$0xff] %vm390_vm1, %v1463_v36  ;;  %v1754_v32 = vmul.f32 %v1641_v40, %v1530_v43  ;;  %v3065_v40 = vld [vmem:[%s3815_s9 + $0x48] sm:$0xff] }
 0x1ae   : > { %v1314_v51 = vpop.f32.mrf.mxu2 }
 0x1af   : > { %v1403_v52 = vpop.f32.mrf.mxu3  ;;  %v1315_v46 = vadd.f32 %v1314_v51, %v1226_v26  ;;  %v1780_v55 = vpack.c.bf16 %v1754_v32, %v1753_v17  ;;  %v1661_v26 = vpop.permute.xlu0 %1660 }
 0x1b0   : > { %v1656_v17 = vpop.permute.xlu2 %1655 }
 0x1b1   : > { %v1404_v0 = vadd.f32 %v1403_v52, %v1315_v46  ;;  %2942 = vmatmul.msk.bf16.gmra.mxu1 %vm390_vm1, %v1780_v55  ;;  %v3949_v37 = vpop.f32.mrf.mxu0 }
 0x1b2   : > { %2930 = vmatmul.msk.bf16.gmra.mxu0 %vm390_vm1, %v3065_v40 }
 0x1b3   : > { %v1464_v2 = vadd.f32 %v1404_v0, %v436_v60  ;;  %1356 = vmatmul.bf16.gmra.mxu2 %v2724_v56 }
 0x1b4   : > { %1445 = vmatmul.bf16.gmra.mxu3 %v2728_v33  ;;  %v1531_v7 = vld [vmem:[#allocation2 + $0x60] sm:$0xff] }
 0x1b5   : > { %1497 = vst.msk [vmem:[#allocation2 + $0x68] sm:$0xff] %vm390_vm1, %v1464_v2  ;;  %v1755_v22 = vmul.f32 %v1646_v14, %v1531_v7 }
 0x1b6   : > { %v1317_v61 = vpop.f32.mrf.mxu2 }
 0x1b7   : > { %v1406_v41 = vpop.f32.mrf.mxu3  ;;  %v1318_v57 = vadd.f32 %v1317_v61, %v1229_v1 }
 0x1b8   : > { %v1671_v13 = vpop.permute.xlu2 %1670 }
 0x1b9   : > { %v1407_v12 = vadd.f32 %v1406_v41, %v1318_v57  ;;  %v3955_v33 = vpop.f32.mrf.mxu0  ;;  %v441_v41 = vld [vmem:[#allocation2 + $0x90] sm:$0xff] }
 0x1ba   : > { %v3066_v57 = vld [vmem:[%s3815_s9 + $0x50] sm:$0xff] }
 0x1bb   : > { %v1465_v58 = vadd.f32 %v1407_v12, %v437_v9  ;;  %v1666_v12 = vpop.permute.xlu1 %1665 }
 0x1bc   : > { %v1532_v18 = vld [vmem:[#allocation2 + $0x68] sm:$0xff] }
 0x1bd   : > { %1498 = vst.msk [vmem:[#allocation2 + $0x70] sm:$0xff] %vm390_vm1, %v1465_v58  ;;  %v1756_v23 = vmul.f32 %v1651_v16, %v1532_v18 }
 0x1be   : > { %v1319_v11 = vpop.f32.mrf.mxu2 }
 0x1bf   : > { %v1408_v24 = vpop.f32.mrf.mxu3  ;;  %v1320_v49 = vadd.f32 %v1319_v11, %v1231_v20  ;;  %v1781_v59 = vpack.c.bf16 %v1756_v23, %v1755_v22  ;;  %v442_v11 = vld [vmem:[#allocation2 + $0x98] sm:$0xff] }
 0x1c1   : > { %v1409_v31 = vadd.f32 %v1408_v24, %v1320_v49  ;;  %2943 = vmatmul.msk.bf16.gmra.mxu1 %vm390_vm1, %v1781_v59  ;;  %v3960_v61 = vpop.f32.mrf.mxu0 }
 0x1c2   : > { %2931 = vmatmul.msk.bf16.gmra.mxu0 %vm390_vm1, %v3066_v57 }
 0x1c3   : > { %v1466_v34 = vadd.f32 %v1409_v31, %v438_v30  ;;  %v3973_v30 = vld [vmem:[%s4145_s6] ss:$0 sm:$0xff] }
 0x1c4   : > { %v1533_v44 = vld [vmem:[#allocation2 + $0x70] sm:$0xff] }
 0x1c5   : > { %1499 = vst.msk [vmem:[#allocation2 + $0x78] sm:$0xff] %vm390_vm1, %v1466_v34  ;;  %v1757_v51 = vmul.f32 %v1656_v17, %v1533_v44  ;;  %v1676_v17 = vpop.permute.xlu0 %1675 }
 0x1c6   : > { %v1322_v35 = vpop.f32.mrf.mxu2 }
 0x1c7   : > { %v1411_v36 = vpop.f32.mrf.mxu3  ;;  %v1323_v3 = vadd.f32 %v1322_v35, %v3682_v6 }
 0x1c9   : > { %v1412_v43 = vadd.f32 %v1411_v36, %v1323_v3  ;;  %v3966_v23 = vpop.f32.mrf.mxu0 }
 0x1cb   : > { %v1467_v50 = vadd.f32 %v1412_v43, %v439_v38  ;;  %v443_v38 = vld [vmem:[#allocation2 + $0xa0] sm:$0xff] }
 0x1cc   : > { %v1534_v32 = vld [vmem:[#allocation2 + $0x78] sm:$0xff] }
 0x1cd   : > { %1500 = vst.msk [vmem:[#allocation2 + $0x80] sm:$0xff] %vm390_vm1, %v1467_v50  ;;  %v1758_v52 = vmul.f32 %v1661_v26, %v1534_v32  ;;  %v1681_v32 = vpop.permute.xlu1 %1680 }
 0x1ce   : > { %v1324_v46 = vpop.f32.mrf.mxu2 }
 0x1cf   : > { %v1413_v55 = vpop.f32.mrf.mxu3  ;;  %v1325_v6 = vadd.f32 %v1324_v46, %v3694_v21  ;;  %v1782_v56 = vpack.c.bf16 %v1758_v52, %v1757_v51 }
 0x1d1   : > { %v1414_v53 = vadd.f32 %v1413_v55, %v1325_v6  ;;  %2944 = vmatmul.msk.bf16.gmra.mxu1 %vm390_vm1, %v1782_v56  ;;  %v3977_v36 = vpop.f32.mrf.mxu0 }
 0x1d3   : > { %v1468_v60 = vadd.f32 %v1414_v53, %v440_v47 }
 0x1d4   : > { %v1535_v21 = vld [vmem:[#allocation2 + $0x80] sm:$0xff] }
 0x1d5   : > { %1501 = vst.msk [vmem:[#allocation2 + $0x88] sm:$0xff] %vm390_vm1, %v1468_v60  ;;  %v1759_v58 = vmul.f32 %v1666_v12, %v1535_v21 }
 0x1d6   : > { %v1327_v0 = vpop.f32.mrf.mxu2 }
 0x1d7   : > { %v1416_v1 = vpop.f32.mrf.mxu3  ;;  %v1328_v2 = vadd.f32 %v1327_v0, %v3698_v28 }
 0x1d9   : > { %v1417_v8 = vadd.f32 %v1416_v1, %v1328_v2  ;;  %v3987_v0 = vpop.f32.mrf.mxu0  ;;  %v444_v1 = vld [vmem:[#allocation2 + $0xa8] sm:$0xff] }
 0x1db   : > { %v1469_v9 = vadd.f32 %v1417_v8, %v441_v41 }
 0x1dc   : > { %v1536_v7 = vld [vmem:[#allocation2 + $0x88] sm:$0xff] }
 0x1dd   : > { %1502 = vst.msk [vmem:[#allocation2 + $0x90] sm:$0xff] %vm390_vm1, %v1469_v9  ;;  %v1760_v14 = vmul.f32 %v1671_v13, %v1536_v7  ;;  %v445_v7 = vld [vmem:[#allocation2 + $0xb0] sm:$0xff] }
 0x1de   : > { %v1329_v16 = vpop.f32.mrf.mxu2  ;;  %v2106_v20 = vpop.f32.mrf.mxu1 }
 0x1df   : > { %v1418_v18 = vpop.f32.mrf.mxu3  ;;  %v1330_v28 = vadd.f32 %v1329_v16, %v3709_v42  ;;  %v1783_v22 = vpack.c.bf16 %v1760_v14, %v1759_v58  ;;  %v2107_v59 = vadd.f32 %v2106_v20, %v3939_v5  ;;  %v3067_v5 = vld [vmem:[%s3815_s9 + $0x58] sm:$0xff]  ;;  %v3068_v14 = vld [vmem:[%s3815_s9 + $0x60] sm:$0xff]  ;;  %v1691_v20 = vpop.permute.xlu0 %1690 }
 0x1e0   : > { %2932 = vmatmul.msk.bf16.gmra.mxu0 %vm390_vm1, %v3067_v5 }
 0x1e1   : > { %v1419_v24 = vadd.f32 %v1418_v18, %v1330_v28  ;;  %2945 = vmatmul.msk.bf16.gmra.mxu1 %vm390_vm1, %v1783_v22  ;;  %v2190_v3 = vadd.f32 %v3973_v30, %v2107_v59  ;;  %v3996_v12 = vpop.f32.mrf.mxu0  ;;  %v1686_v22 = vpop.permute.xlu2 %1685 }
 0x1e3   : > { %v1470_v49 = vadd.f32 %v1419_v24, %v442_v11 }
 0x1e4   : > { %v1537_v50 = vld [vmem:[#allocation2 + $0x90] sm:$0xff] }
 0x1e5   : > { %1503 = vst.msk [vmem:[#allocation2 + $0x98] sm:$0xff] %vm390_vm1, %v1470_v49  ;;  %v1761_v46 = vmul.f32 %v1676_v17, %v1537_v50 }
 0x1e6   : > { %v1332_v42 = vpop.f32.mrf.mxu2  ;;  %v2108_v35 = vpop.f32.mrf.mxu1 }
 0x1e7   : > { %v1421_v31 = vpop.f32.mrf.mxu3  ;;  %v1333_v34 = vadd.f32 %v1332_v42, %v3712_v48  ;;  %v2109_v40 = vadd.f32 %v2108_v35, %v3944_v27  ;;  %v2222_v48 = vmax.f32 %v2190_v3, 0.0 }
 0x1e9   : > { %v1422_v43 = vadd.f32 %v1421_v31, %v1333_v34  ;;  %v2191_v44 = vadd.f32 %v3973_v30, %v2109_v40  ;;  %v446_v40 = vld [vmem:[#allocation2 + $0xb8] sm:$0xff] }
 0x1eb   : > { %v1471_v26 = vadd.f32 %v1422_v43, %v443_v38  ;;  %v2223_v51 = vmax.f32 %v2191_v44, 0.0  ;;  %v4005_v38 = vpop.f32.mrf.mxu0 }
 0x1ec   : > { %v1538_v52 = vld [vmem:[#allocation2 + $0x98] sm:$0xff] }
 0x1ed   : > { %1504 = vst.msk [vmem:[#allocation2 + $0xa0] sm:$0xff] %vm390_vm1, %v1471_v26  ;;  %v1762_v55 = vmul.f32 %v1681_v32, %v1538_v52  ;;  %v3076_v6 = vpack.c.bf16 %v2223_v51, %v2222_v48  ;;  %v447_v51 = vld [vmem:[#allocation2 + $0xc0] sm:$0xff] }
 0x1ee   : > { %v1334_v27 = vpop.f32.mrf.mxu2  ;;  %v2111_v53 = vpop.f32.mrf.mxu1 }
 0x1ef   : > { %v1423_v56 = vpop.f32.mrf.mxu3  ;;  %v1335_v47 = vadd.f32 %v1334_v27, %v3723_v62  ;;  %v1784_v60 = vpack.c.bf16 %v1762_v55, %v1761_v46  ;;  %3077 = vst [vmem:[%s3989_s21] sm:$0xff] %v3076_v6   ;;  %v2112_v57 = vadd.f32 %v2111_v53, %v3949_v37  ;;  %v3069_v46 = vld [vmem:[%s3815_s9 + $0x68] sm:$0xff] }
 0x1f0   : > { %2933 = vmatmul.msk.bf16.gmra.mxu0 %vm390_vm1, %v3068_v14 }
 0x1f1   : > { %v1424_v2 = vadd.f32 %v1423_v56, %v1335_v47  ;;  %2946 = vmatmul.msk.bf16.gmra.mxu1 %vm390_vm1, %v1784_v60  ;;  %v2192_v13 = vadd.f32 %v3973_v30, %v2112_v57  ;;  %v1696_v56 = vpop.permute.xlu1 %1695  ;;  %v1701_v47 = vpop.permute.xlu2 %1700 }
 0x1f3   : > { %v1472_v41 = vadd.f32 %v1424_v2, %v444_v1  ;;  %v4012_v32 = vpop.f32.mrf.mxu0 }
 0x1f4   : > { %v1539_v28 = vld [vmem:[#allocation2 + $0xa0] sm:$0xff] }
 0x1f5   : > { %1505 = vst.msk [vmem:[#allocation2 + $0xa8] sm:$0xff] %vm390_vm1, %v1472_v41  ;;  %v1763_v49 = vmul.f32 %v1686_v22, %v1539_v28 }
 0x1f6   : > { %v1337_v8 = vpop.f32.mrf.mxu2  ;;  %v2113_v9 = vpop.f32.mrf.mxu1 }
 0x1f7   : > { %v1426_v62 = vpop.f32.mrf.mxu3  ;;  %v1338_v21 = vadd.f32 %v1337_v8, %v3726_v4  ;;  %v2114_v58 = vadd.f32 %v2113_v9, %v3955_v33  ;;  %v2224_v4 = vmax.f32 %v2192_v13, 0.0  ;;  %v448_v13 = vld [vmem:[#allocation2 + $0xc8] sm:$0xff] }
 0x1f9   : > { %v1427_v16 = vadd.f32 %v1426_v62, %v1338_v21  ;;  %v2193_v18 = vadd.f32 %v3973_v30, %v2114_v58 }
 0x1fb   : > { %v1473_v37 = vadd.f32 %v1427_v16, %v445_v7  ;;  %v2225_v11 = vmax.f32 %v2193_v18, 0.0  ;;  %v4021_v9 = vpop.f32.mrf.mxu0 }
 0x1fc   : > { %v1540_v24 = vld [vmem:[#allocation2 + $0xa8] sm:$0xff] }
 0x1fd   : > { %1506 = vst.msk [vmem:[#allocation2 + $0xb0] sm:$0xff] %vm390_vm1, %v1473_v37  ;;  %v1764_v59 = vmul.f32 %v1691_v20, %v1540_v24  ;;  %v3081_v42 = vpack.c.bf16 %v2225_v11, %v2224_v4  ;;  %v449_v20 = vld [vmem:[#allocation2 + $0xd0] sm:$0xff] }
 0x1fe   : > { %v1339_v33 = vpop.f32.mrf.mxu2  ;;  %v2116_v35 = vpop.f32.mrf.mxu1  ;;  %v3070_v4 = vld [vmem:[%s3815_s9 + $0x70] sm:$0xff] }
 0x1ff   : > { %v1428_v31 = vpop.f32.mrf.mxu3  ;;  %v1340_v34 = vadd.f32 %v1339_v33, %v3737_v19  ;;  %v1785_v3 = vpack.c.bf16 %v1764_v59, %v1763_v49  ;;  %3153 = vst [vmem:[%s3989_s21 + $0x8] sm:$0xff] %v3081_v42   ;;  %v2117_v44 = vadd.f32 %v2116_v35, %v3960_v61  ;;  %v1706_v42 = vpop.permute.xlu0 %1705 }
 0x200   : > { %2934 = vmatmul.msk.bf16.gmra.mxu0 %vm390_vm1, %v3069_v46  ;;  %v1711_v33 = vpop.permute.xlu1 %1710 }
 0x201   : > { %v1429_v5 = vadd.f32 %v1428_v31, %v1340_v34  ;;  %2947 = vmatmul.msk.bf16.gmra.mxu1 %vm390_vm1, %v1785_v3  ;;  %v2194_v48 = vadd.f32 %v3973_v30, %v2117_v44 }
 0x203   : > { %v1474_v43 = vadd.f32 %v1429_v5, %v446_v40  ;;  %v4031_v24 = vpop.f32.mrf.mxu0 }
 0x204   : > { %v1541_v27 = vld [vmem:[#allocation2 + $0xb0] sm:$0xff] }
 0x205   : > { %1507 = vst.msk [vmem:[#allocation2 + $0xb8] sm:$0xff] %vm390_vm1, %v1474_v43  ;;  %v1765_v1 = vmul.f32 %v1696_v56, %v1541_v27  ;;  %v451_v27 = vld [vmem:[#allocation2 + $0xe0] sm:$0xff]  ;;  %v3071_v56 = vld [vmem:[%s3815_s9 + $0x78] sm:$0xff] }
 0x206   : > { %v1342_v50 = vpop.f32.mrf.mxu2  ;;  %v2118_v19 = vpop.f32.mrf.mxu1 }
 0x207   : > { %v1431_v26 = vpop.f32.mrf.mxu3  ;;  %v1343_v17 = vadd.f32 %v1342_v50, %v3739_v25  ;;  %v2119_v52 = vadd.f32 %v2118_v19, %v3966_v23  ;;  %v2226_v25 = vmax.f32 %v2194_v48, 0.0 }
 0x209   : > { %v1432_v55 = vadd.f32 %v1431_v26, %v1343_v17  ;;  %v2195_v6 = vadd.f32 %v3973_v30, %v2119_v52  ;;  %v450_v26 = vld [vmem:[#allocation2 + $0xd8] sm:$0xff] }
 0x20b   : > { %v1475_v61 = vadd.f32 %v1432_v55, %v447_v51  ;;  %v2227_v53 = vmax.f32 %v2195_v6, 0.0  ;;  %v4039_v48 = vpop.f32.mrf.mxu0 }
 0x20c   : > { %v1542_v60 = vld [vmem:[#allocation2 + $0xb8] sm:$0xff] }
 0x20d   : > { %1508 = vst.msk [vmem:[#allocation2 + $0xc0] sm:$0xff] %vm390_vm1, %v1475_v61  ;;  %v1766_v2 = vmul.f32 %v1701_v47, %v1542_v60  ;;  %v3086_v41 = vpack.c.bf16 %v2227_v53, %v2226_v25  ;;  %v1721_v60 = vpop.permute.xlu0 %1720 }
 0x20e   : > { %v1344_v23 = vpop.f32.mrf.mxu2  ;;  %v2121_v62 = vpop.f32.mrf.mxu1 }
 0x20f   : > { %v1433_v57 = vpop.f32.mrf.mxu3  ;;  %v1345_v8 = vadd.f32 %v1344_v23, %v3749_v39  ;;  %v1786_v21 = vpack.c.bf16 %v1766_v2, %v1765_v1  ;;  %3154 = vst [vmem:[%s3989_s21 + $0x10] sm:$0xff] %v3086_v41   ;;  %v2122_v14 = vadd.f32 %v2121_v62, %v3977_v36  ;;  %v1716_v1 = vpop.permute.xlu2 %1715 }
 0x210   : > { %2935 = vmatmul.msk.bf16.gmra.mxu0 %vm390_vm1, %v3070_v4 }
 0x211   : > { %v1434_v7 = vadd.f32 %v1433_v57, %v1345_v8  ;;  %2948 = vmatmul.msk.bf16.gmra.mxu1 %vm390_vm1, %v1786_v21  ;;  %v2196_v37 = vadd.f32 %v3973_v30, %v2122_v14  ;;  %v452_v14 = vld [vmem:[#allocation2 + $0xe8] sm:$0xff] }
 0x213   : > { %v1476_v58 = vadd.f32 %v1434_v7, %v448_v13  ;;  %v4050_v8 = vpop.f32.mrf.mxu0 }
 0x214   : > { %v1543_v59 = vld [vmem:[#allocation2 + $0xc0] sm:$0xff] }
 0x215   : > { %1509 = vst.msk [vmem:[#allocation2 + $0xc8] sm:$0xff] %vm390_vm1, %v1476_v58  ;;  %v1767_v35 = vmul.f32 %v1706_v42, %v1543_v59 }
 0x216   : > { %v1347_v16 = vpop.f32.mrf.mxu2  ;;  %v2123_v39 = vpop.f32.mrf.mxu1 }
 0x217   : > { %v1436_v18 = vpop.f32.mrf.mxu3  ;;  %v1348_v28 = vadd.f32 %v1347_v16, %v3751_v45  ;;  %v2124_v22 = vadd.f32 %v2123_v39, %v3987_v0  ;;  %v2228_v45 = vmax.f32 %v2196_v37, 0.0 }
 0x219   : > { %v1437_v11 = vadd.f32 %v1436_v18, %v1348_v28  ;;  %v2197_v49 = vadd.f32 %v3973_v30, %v2124_v22 }
 0x21b   : > { %v1477_v36 = vadd.f32 %v1437_v11, %v449_v20  ;;  %v2229_v31 = vmax.f32 %v2197_v49, 0.0  ;;  %v2003_v4 = vpop.f32.mrf.mxu0  ;;  %v453_v11 = vld [vmem:[#allocation2 + $0xf0] sm:$0xff] }
 0x21c   : > { %v1544_v34 = vld [vmem:[#allocation2 + $0xc8] sm:$0xff] }
 0x21d   : > { %1510 = vst.msk [vmem:[#allocation2 + $0xd0] sm:$0xff] %vm390_vm1, %v1477_v36  ;;  %v1768_v0 = vmul.f32 %v1711_v33, %v1544_v34  ;;  %v3091_v3 = vpack.c.bf16 %v2229_v31, %v2228_v45  ;;  %v1731_v45 = vpop.permute.xlu2 %1730 }
 0x21e   : > { %v1349_v40 = vpop.f32.mrf.mxu2  ;;  %v2126_v44 = vpop.f32.mrf.mxu1 }
 0x21f   : > { %v1438_v5 = vpop.f32.mrf.mxu3  ;;  %v1350_v43 = vadd.f32 %v1349_v40, %v3759_v54  ;;  %v1787_v50 = vpack.c.bf16 %v1768_v0, %v1767_v35  ;;  %3155 = vst [vmem:[%s3989_s21 + $0x18] sm:$0xff] %v3091_v3   ;;  %v2127_v51 = vadd.f32 %v2126_v44, %v3996_v12  ;;  %v454_v44 = vld [vmem:[#allocation2 + $0xf8] sm:$0xff] }
 0x220   : > { %2936 = vmatmul.msk.bf16.gmra.mxu0 %vm390_vm1, %v3071_v56 }
 0x221   : > { %v1439_v17 = vadd.f32 %v1438_v5, %v1350_v43  ;;  %2949 = vmatmul.msk.bf16.gmra.mxu1 %vm390_vm1, %v1787_v50  ;;  %v2198_v6 = vadd.f32 %v3973_v30, %v2127_v51 }
 0x223   : > { %v1478_v19 = vadd.f32 %v1439_v17, %v450_v26  ;;  %v2230_v2 = vmax.f32 %v2198_v6, 0.0  ;;  %v2006_v17 = vpop.f32.mrf.mxu0 }
 0x224   : > { %v1545_v53 = vld [vmem:[#allocation2 + $0xd0] sm:$0xff] }
 0x225   : > { %1511 = vst.msk [vmem:[#allocation2 + $0xd8] sm:$0xff] %vm390_vm1, %v1478_v19  ;;  %v1769_v23 = vmul.f32 %v1716_v1, %v1545_v53 }
 0x226   : > { %v1352_v52 = vpop.f32.mrf.mxu2  ;;  %v2128_v54 = vpop.f32.mrf.mxu1 }
 0x227   : > { %v1441_v46 = vpop.f32.mrf.mxu3  ;;  %v1353_v55 = vadd.f32 %v1352_v52, %v3773_v63  ;;  %v2129_v61 = vadd.f32 %v2128_v54, %v4005_v38 }
 0x229   : > { %v1442_v47 = vadd.f32 %v1441_v46, %v1353_v55  ;;  %v2199_v25 = vadd.f32 %v3973_v30, %v2129_v61 }
 0x22b   : > { %v1479_v12 = vadd.f32 %v1442_v47, %v451_v27  ;;  %v2231_v41 = vmax.f32 %v2199_v25, 0.0  ;;  %v2008_v6 = vpop.f32.mrf.mxu0  ;;  %v1736_v27 = vpop.permute.xlu0 %1735 }
 0x22c   : > { %v1546_v63 = vld [vmem:[#allocation2 + $0xd8] sm:$0xff] }
 0x22d   : > { %1512 = vst.msk [vmem:[#allocation2 + $0xe0] sm:$0xff] %vm390_vm1, %v1479_v12  ;;  %v1770_v57 = vmul.f32 %v1721_v60, %v1546_v63  ;;  %v3096_v38 = vpack.c.bf16 %v2231_v41, %v2230_v2 }
 0x22e   : > { %v1354_v62 = vpop.f32.mrf.mxu2  ;;  %v2131_v7 = vpop.f32.mrf.mxu1 }
 0x22f   : > { %v1443_v21 = vpop.f32.mrf.mxu3  ;;  %v1355_v13 = vadd.f32 %v1354_v62, %v3799_v10  ;;  %v1788_v58 = vpack.c.bf16 %v1770_v57, %v1769_v23  ;;  %3156 = vst [vmem:[%s3989_s21 + $0x20] sm:$0xff] %v3096_v38   ;;  %v2132_v28 = vadd.f32 %v2131_v7, %v4012_v32  ;;  %v1726_v32 = vpop.permute.xlu1 %1725 }
 0x231   : > { %v1444_v16 = vadd.f32 %v1443_v21, %v1355_v13  ;;  %2950 = vmatmul.msk.bf16.gmra.mxu1 %vm390_vm1, %v1788_v58  ;;  %v2200_v10 = vadd.f32 %v3973_v30, %v2132_v28 }
 0x233   : > { %v1480_v18 = vadd.f32 %v1444_v16, %v452_v14  ;;  %v2232_v31 = vmax.f32 %v2200_v10, 0.0  ;;  %v2011_v2 = vpop.f32.mrf.mxu0 }
 0x234   : > { %v1547_v42 = vld [vmem:[#allocation2 + $0xe0] sm:$0xff] }
 0x235   : > { %1513 = vst.msk [vmem:[#allocation2 + $0xe8] sm:$0xff] %vm390_vm1, %v1480_v18 }
 0x236   : > { %v1357_v39 = vpop.f32.mrf.mxu2  ;;  %v2133_v22 = vpop.f32.mrf.mxu1 }
 0x237   : > { %v1446_v37 = vpop.f32.mrf.mxu3  ;;  %v1358_v20 = vadd.f32 %v1357_v39, %v3823_v15  ;;  %v2134_v49 = vadd.f32 %v2133_v22, %v4021_v9  ;;  %v1771_v15 = vmul.f32 %v1726_v32, %v1547_v42  ;;  %v1741_v61 = vpop.permute.xlu1 %1740 }
 0x239   : > { %v1447_v59 = vadd.f32 %v1446_v37, %v1358_v20  ;;  %v2201_v36 = vadd.f32 %v3973_v30, %v2134_v49 }
 0x23b   : > { %v1481_v33 = vadd.f32 %v1447_v59, %v453_v11  ;;  %v2233_v34 = vmax.f32 %v2201_v36, 0.0  ;;  %v2013_v7 = vpop.f32.mrf.mxu0 }
 0x23c   : > { %v1548_v35 = vld [vmem:[#allocation2 + $0xe8] sm:$0xff] }
 0x23d   : > { %1514 = vst.msk [vmem:[#allocation2 + $0xf0] sm:$0xff] %vm390_vm1, %v1481_v33  ;;  %v1772_v0 = vmul.f32 %v1731_v45, %v1548_v35  ;;  %v3101_v3 = vpack.c.bf16 %v2233_v34, %v2232_v31 }
 0x23e   : > { %v1359_v40 = vpop.f32.mrf.mxu2  ;;  %v2136_v9 = vpop.f32.mrf.mxu1 }
 0x23f   : > { %v1360_v5 = vadd.f32 %v1359_v40, %v3849_v29  ;;  %v1789_v43 = vpack.c.bf16 %v1772_v0, %v1771_v15  ;;  %3157 = vst [vmem:[%s3989_s21 + $0x28] sm:$0xff] %v3101_v3   ;;  %v1448_v50 = vpop.f32.mrf.mxu3  ;;  %v2137_v51 = vadd.f32 %v2136_v9, %v4031_v24 }
 0x241   : > { %v1449_v26 = vadd.f32 %v1448_v50, %v1360_v5  ;;  %2951 = vmatmul.msk.bf16.gmra.mxu1 %vm390_vm1, %v1789_v43  ;;  %v2202_v46 = vadd.f32 %v3973_v30, %v2137_v51 }
 0x243   : > { %v1482_v19 = vadd.f32 %v1449_v26, %v454_v44  ;;  %v2234_v56 = vmax.f32 %v2202_v46, 0.0 }
 0x244   : > { %v1549_v54 = vld [vmem:[#allocation2 + $0xf0] sm:$0xff] }
 0x245   : > { %1515 = vst.msk [vmem:[#allocation2 + $0xf8] sm:$0xff] %vm390_vm1, %v1482_v19  ;;  %v1773_v53 = vmul.f32 %v1736_v27, %v1549_v54 }
 0x246   : > { %v2138_v52 = vpop.f32.mrf.mxu1 }
 0x247   : > { %v2139_v29 = vadd.f32 %v2138_v52, %v4039_v48 }
 0x249   : > { %v2203_v55 = vadd.f32 %v3973_v30, %v2139_v29 }
 0x24b   : > { %v2235_v47 = vmax.f32 %v2203_v55, 0.0 }
 0x24c   : > { %v1550_v25 = vld [vmem:[#allocation2 + $0xf8] sm:$0xff] }
 0x24d   : > { %v1774_v12 = vmul.f32 %v1741_v61, %v1550_v25  ;;  %v3106_v24 = vpack.c.bf16 %v2235_v47, %v2234_v56 }
 0x24e   : > { %v2141_v60 = vpop.f32.mrf.mxu1 }
 0x24f   : > { %v1790_v1 = vpack.c.bf16 %v1774_v12, %v1773_v53  ;;  %3158 = vst [vmem:[%s3989_s21 + $0x30] sm:$0xff] %v3106_v24   ;;  %v2142_v48 = vadd.f32 %v2141_v60, %v4050_v8  ;;  %v2016_v8 = vpop.f32.mrf.mxu0 }
 0x251   : > { %2952 = vmatmul.msk.bf16.gmra.mxu1 %vm390_vm1, %v1790_v1  ;;  %v2204_v63 = vadd.f32 %v3973_v30, %v2142_v48 }
 0x253   : > { %v2236_v38 = vmax.f32 %v2204_v63, 0.0 }
 0x256   : > { %v2143_v41 = vpop.f32.mrf.mxu1 }
 0x257   : > { %v2144_v23 = vadd.f32 %v2143_v41, %v2003_v4  ;;  %v2018_v4 = vpop.f32.mrf.mxu0 }
 0x259   : > { %v2205_v57 = vadd.f32 %v3973_v30, %v2144_v23 }
 0x25b   : > { %v2237_v62 = vmax.f32 %v2205_v57, 0.0 }
 0x25d   : > { %v3111_v21 = vpack.c.bf16 %v2237_v62, %v2236_v38 }
 0x25e   : > { %v2146_v13 = vpop.f32.mrf.mxu1 }
 0x25f   : > { %3159 = vst [vmem:[%s3989_s21 + $0x38] sm:$0xff] %v3111_v21   ;;  %v2147_v58 = vadd.f32 %v2146_v13, %v2006_v17  ;;  %v2021_v32 = vpop.f32.mrf.mxu0 }
 0x261   : > { %v2206_v16 = vadd.f32 %v3973_v30, %v2147_v58 }
 0x263   : > { %v2238_v39 = vmax.f32 %v2206_v16, 0.0 }
 0x266   : > { %v2148_v14 = vpop.f32.mrf.mxu1 }
 0x267   : > { %v2149_v18 = vadd.f32 %v2148_v14, %v2008_v6  ;;  %v2023_v15 = vpop.f32.mrf.mxu0 }
 0x269   : > { %v2207_v28 = vadd.f32 %v3973_v30, %v2149_v18 }
 0x26b   : > { %v2239_v37 = vmax.f32 %v2207_v28, 0.0 }
 0x26d   : > { %v3116_v20 = vpack.c.bf16 %v2239_v37, %v2238_v39 }
 0x26e   : > { %v2151_v22 = vpop.f32.mrf.mxu1 }
 0x26f   : > { %3160 = vst [vmem:[%s3989_s21 + $0x40] sm:$0xff] %v3116_v20   ;;  %v2152_v10 = vadd.f32 %v2151_v22, %v2011_v2  ;;  %v2026_v50 = vpop.f32.mrf.mxu0 }
 0x271   : > { %v2208_v49 = vadd.f32 %v3973_v30, %v2152_v10 }
 0x273   : > { %v2240_v42 = vmax.f32 %v2208_v49, 0.0 }
 0x276   : > { %v2153_v11 = vpop.f32.mrf.mxu1 }
 0x277   : > { %v2154_v59 = vadd.f32 %v2153_v11, %v2013_v7  ;;  %v2028_v46 = vpop.f32.mrf.mxu0 }
 0x279   : > { %v2209_v36 = vadd.f32 %v3973_v30, %v2154_v59 }
 0x27b   : > { %v2241_v33 = vmax.f32 %v2209_v36, 0.0 }
 0x27d   : > { %v3121_v45 = vpack.c.bf16 %v2241_v33, %v2240_v42 }
 0x27e   : > { %v2156_v31 = vpop.f32.mrf.mxu1 }
 0x27f   : > { %3161 = vst [vmem:[%s3989_s21 + $0x48] sm:$0xff] %v3121_v45   ;;  %v2157_v34 = vadd.f32 %v2156_v31, %v2016_v8  ;;  %v2031_v61 = vpop.f32.mrf.mxu0 }
 0x281   : > { %v2210_v0 = vadd.f32 %v3973_v30, %v2157_v34 }
 0x283   : > { %v2242_v5 = vmax.f32 %v2210_v0, 0.0 }
 0x286   : > { %v2158_v35 = vpop.f32.mrf.mxu1 }
 0x287   : > { %v2159_v3 = vadd.f32 %v2158_v35, %v2018_v4  ;;  %v2033_v1 = vpop.f32.mrf.mxu0 }
 0x289   : > { %v2211_v40 = vadd.f32 %v3973_v30, %v2159_v3 }
 0x28b   : > { %v2243_v9 = vmax.f32 %v2211_v40, 0.0 }
 0x28d   : > { %v3126_v43 = vpack.c.bf16 %v2243_v9, %v2242_v5 }
 0x28e   : > { %v2161_v44 = vpop.f32.mrf.mxu1 }
 0x28f   : > { %3162 = vst [vmem:[%s3989_s21 + $0x50] sm:$0xff] %v3126_v43   ;;  %v2162_v26 = vadd.f32 %v2161_v44, %v2021_v32  ;;  %v2036_v57 = vpop.f32.mrf.mxu0 }
 0x291   : > { %v2212_v19 = vadd.f32 %v3973_v30, %v2162_v26 }
 0x293   : > { %v2244_v29 = vmax.f32 %v2212_v19, 0.0 }
 0x296   : > { %v2163_v17 = vpop.f32.mrf.mxu1 }
 0x297   : > { %v2164_v51 = vadd.f32 %v2163_v17, %v2023_v15  ;;  %v2038_v58 = vpop.f32.mrf.mxu0 }
 0x299   : > { %v2213_v52 = vadd.f32 %v3973_v30, %v2164_v51 }
 0x29b   : > { %v2245_v55 = vmax.f32 %v2213_v52, 0.0 }
 0x29d   : > { %v3131_v54 = vpack.c.bf16 %v2245_v55, %v2244_v29 }
 0x29e   : > { %v2166_v6 = vpop.f32.mrf.mxu1 }
 0x29f   : > { %3163 = vst [vmem:[%s3989_s21 + $0x58] sm:$0xff] %v3131_v54   ;;  %v2167_v27 = vadd.f32 %v2166_v6, %v2026_v50  ;;  %v2041_v20 = vpop.f32.mrf.mxu0 }
 0x2a1   : > { %v2214_v47 = vadd.f32 %v3973_v30, %v2167_v27 }
 0x2a3   : > { %v2246_v12 = vmax.f32 %v2214_v47, 0.0 }
 0x2a6   : > { %v2168_v56 = vpop.f32.mrf.mxu1 }
 0x2a7   : > { %v2169_v25 = vadd.f32 %v2168_v56, %v2028_v46  ;;  %v2043_v11 = vpop.f32.mrf.mxu0 }
 0x2a9   : > { %v2215_v53 = vadd.f32 %v3973_v30, %v2169_v25 }
 0x2ab   : > { %v2247_v24 = vmax.f32 %v2215_v53, 0.0 }
 0x2ad   : > { %v3136_v60 = vpack.c.bf16 %v2247_v24, %v2246_v12 }
 0x2ae   : > { %v2171_v48 = vpop.f32.mrf.mxu1 }
 0x2af   : > { %3164 = vst [vmem:[%s3989_s21 + $0x60] sm:$0xff] %v3136_v60   ;;  %v2172_v2 = vadd.f32 %v2171_v48, %v2031_v61 }
 0x2b1   : > { %v2216_v63 = vadd.f32 %v3973_v30, %v2172_v2 }
 0x2b3   : > { %v2248_v62 = vmax.f32 %v2216_v63, 0.0 }
 0x2b6   : > { %v2173_v41 = vpop.f32.mrf.mxu1 }
 0x2b7   : > { %v2174_v23 = vadd.f32 %v2173_v41, %v2033_v1 }
 0x2b9   : > { %v2217_v38 = vadd.f32 %v3973_v30, %v2174_v23 }
 0x2bb   : > { %v2249_v21 = vmax.f32 %v2217_v38, 0.0 }
 0x2bd   : > { %v3141_v13 = vpack.c.bf16 %v2249_v21, %v2248_v62 }
 0x2be   : > { %v2176_v7 = vpop.f32.mrf.mxu1 }
 0x2bf   : > { %3165 = vst [vmem:[%s3989_s21 + $0x68] sm:$0xff] %v3141_v13   ;;  %v2177_v14 = vadd.f32 %v2176_v7, %v2036_v57 }
 0x2c1   : > { %v2218_v18 = vadd.f32 %v3973_v30, %v2177_v14 }
 0x2c3   : > { %v2250_v39 = vmax.f32 %v2218_v18, 0.0 }
 0x2c6   : > { %v2178_v16 = vpop.f32.mrf.mxu1 }
 0x2c7   : > { %v2179_v8 = vadd.f32 %v2178_v16, %v2038_v58 }
 0x2c9   : > { %v2219_v28 = vadd.f32 %v3973_v30, %v2179_v8 }
 0x2cb   : > { %v2251_v37 = vmax.f32 %v2219_v28, 0.0 }
 0x2cd   : > { %v3146_v22 = vpack.c.bf16 %v2251_v37, %v2250_v39 }
 0x2ce   : > { %v2181_v4 = vpop.f32.mrf.mxu1 }
 0x2cf   : > { %3166 = vst [vmem:[%s3989_s21 + $0x70] sm:$0xff] %v3146_v22   ;;  %v2182_v10 = vadd.f32 %v2181_v4, %v2041_v20 }
 0x2d1   : > { %v2220_v59 = vadd.f32 %v3973_v30, %v2182_v10 }
 0x2d3   : > { %v2252_v33 = vmax.f32 %v2220_v59, 0.0 }
 0x2d6   : > { %v2183_v49 = vpop.f32.mrf.mxu1 }
 0x2d7   : > { %v2184_v36 = vadd.f32 %v2183_v49, %v2043_v11 }
 0x2d9   : > { %v2221_v42 = vadd.f32 %v3973_v30, %v2184_v36 }
 0x2db   : > { %v2253_v32 = vmax.f32 %v2221_v42, 0.0 }
 0x2dd   : > { %v3151_v45 = vpack.c.bf16 %v2253_v32, %v2252_v33 }
 0x2df   : > { %3167 = vst [vmem:[%s3989_s21 + $0x78] sm:$0xff] %v3151_v45  }
 0x2e0   : > { %3313 = shalt.err (!%p3310_p0)
}
 0x2e1   : > { %s3374_s28 = smov 64   ;;  %s3375_s21 = smov 4  }
 0x2e2   : > { %3186 = dma.vmem_to_hbm [thread:$0]  (%p3467_p9), %s2332_s8, 2048, %s2334_s10, %s2319_s27, %s3374_s28, %s3374_s28, %s3375_s21  }
 0x2e3 PF: > { %s2348_s22 = sand.u32 1, %s3348_s24   ;;  %p3193_p1 = pnand %p2461_p12, %p3474_p11 }
 0x2e4   : > { %s2349_s30 = scalar_lea.sflag [#allocation5], %s2348_s22 }
 0x2e5   : > { %p3194_p2 = pneg %p3193_p1 }
 0x2e7   : > { %3343 = dma.done.wait (%p3194_p2), %s2349_s30, 2048  }
 0x2e8   : > { %3345 = vsyncadd (%p3194_p2), %s2349_s30, 4294965248  ;;  %s23_s29 = sadd.s32 1, %s3368_s29   ;;  %s4155_s27 = sld [smem:[#allocation9_spill]] }
 0x2e9   : > { %p20_p3 = scmp.ge.s32.totalorder %s23_s29, 4   ;;  %s4156_s28 = sld [smem:[#allocation10_spill]] }
 0x2ea   : > { %s4157_s24 = smov %s3352_s25  ;;  %s4158_s25 = smov %s3356_s26 }
 0x2eb   : > { %s4159_s26 = smov %s3472_s15  ;;  %22 = sbr.rel (!%p20_p3) target bundleno = 6 (0x6), region = 110 }
 0x2f0   :  { %2355 = vsyncpa [#allocation4], 1 }
 0x2f1   :  { %2357 = vsyncpa [#allocation4 + $0x1], 1 }
 0x2f2   :  { %2358 = vsyncpa [#allocation5], 1 }
 0x2f3   :  { %2360 = vsyncpa [#allocation5 + $0x1], 1 }

</bundles_post_ra>
